<compile_context>
chip_gen: v7x
topology: tpu7x:2x2x1
jax: 0.10.0
libtpu: 0.0.40
codegen_flags: <defaults>
</compile_context>

<pallas_src>
import functools

import jax
import jax.numpy as jnp
from jax import lax
from jax.experimental import pallas as pl
from jax.experimental.pallas import tpu as pltpu


# ----------------------------------------------------------------------------
# In-kernel helpers (traced inside the Pallas kernels)
# ----------------------------------------------------------------------------
def _sum_all(a):
    """Full reduction of a 2-D value to a (1,1) array (avoid rank-0 in the kernel)."""
    return jnp.sum(jnp.sum(a, axis=-1, keepdims=True), axis=-2, keepdims=True)


def _gn_relu_pool(ys, gamma, beta, eps):
    """GroupNorm(1, C) over the 4 phase blocks + per-channel affine + ReLU + 2x2 maxpool.

    ys: list of 4 f32 (C, P) phase blocks that together form the full conv output of one
        sample; the 2x2/stride-2 maxpool is exactly the elementwise max over the 4 phases.
    """
    n = 4.0 * ys[0].size                                      # = C * OH * OW
    mean = _sum_all(ys[0] + ys[1] + ys[2] + ys[3]) / n        # (1, 1)
    var = sum(_sum_all((y - mean) ** 2) for y in ys) / n      # (1, 1), biased (PyTorch GN)
    scale = gamma * lax.rsqrt(var + eps)                      # (C, 1)
    shift = beta - mean * scale                               # (C, 1)
    zs = [jnp.maximum(y * scale + shift, 0.0) for y in ys]    # normalize+affine, then ReLU
    return jnp.maximum(jnp.maximum(zs[0], zs[1]), jnp.maximum(zs[2], zs[3]))


# ----------------------------------------------------------------------------
# Pallas kernels
# ----------------------------------------------------------------------------
def _conv_gn_relu_pool_kernel(p_ref, w_ref, b_ref, g_ref, beta_ref, o_ref, *, eps):
    """One sample: conv GEMM (4 pooling phases) + bias + GroupNorm(1,C) + ReLU + pool.

    p_ref:    (4, K, P) bf16  im2col patches grouped by pooling phase (P pooled pixels)
    w_ref:    (C, K)    bf16  conv weight in (Cout, Cin*kh*kw) GEMM layout
    b_ref:    (C, 1)    f32   conv bias
    g_ref, beta_ref: (C, 1) f32  GroupNorm affine
    o_ref:    (C, P)    bf16  pooled output, lane-dense, NCHW-flattened spatial on lanes
    """
    w = w_ref[...]
    bias = b_ref[...]
    ys = [jnp.dot(w, p_ref[ph], preferred_element_type=jnp.float32) + bias
          for ph in range(4)]                                  # 4 x (C, P) f32
    pooled = _gn_relu_pool(ys, g_ref[...], beta_ref[...], eps)
    o_ref[...] = pooled.astype(o_ref.dtype)


def _conv2_gn_pool_fc_kernel(p_ref, w2_ref, b2_ref, g2_ref, be2_ref,
                             w1_ref, b1_ref, wf2_ref, bf2_ref, wf3_ref, bf3_ref,
                             o_ref, *, eps):
    """One sample: conv2 stage (as above) fused with fc1 -> relu -> fc2 -> relu -> fc3."""
    w2 = w2_ref[...]
    bias2 = b2_ref[...]
    ys = [jnp.dot(w2, p_ref[ph], preferred_element_type=jnp.float32) + bias2
          for ph in range(4)]                                  # 4 x (16, 25) f32
    pooled = _gn_relu_pool(ys, g2_ref[...], be2_ref[...], eps) # (16, 25), NCHW order
    pooled = pooled.astype(w1_ref.dtype)                       # bf16 for the MXU

    # fc1: (1, 400) @ (400, 120) expressed as a sum over the 16 channel blocks of the
    # NCHW flatten -- no in-kernel reshape/transpose needed (flatten absorbed in weights).
    h = b1_ref[...]                                            # (1, 120) f32
    for c in range(w1_ref.shape[0]):
        h = h + jnp.dot(pooled[c:c + 1, :], w1_ref[c],
                        preferred_element_type=jnp.float32)
    h = jnp.maximum(h, 0.0)
    h = jnp.maximum(
        jnp.dot(h.astype(wf2_ref.dtype), wf2_ref[...],
                preferred_element_type=jnp.float32) + bf2_ref[...], 0.0)   # (1, 84)
    o_ref[...] = (jnp.dot(h.astype(wf3_ref.dtype), wf3_ref[...],
                          preferred_element_type=jnp.float32) + bf3_ref[...])  # (1, 10)


def _fc3_kernel(x_ref, w_ref, b_ref, o_ref):
    o_ref[...] = (jnp.dot(x_ref[...], w_ref[...], preferred_element_type=jnp.float32)
                  + b_ref[...])


# ----------------------------------------------------------------------------
# pallas_call wrappers
# ----------------------------------------------------------------------------
def _const_map(ndim):
    return lambda bb: (0,) * ndim


def conv_gn_relu_pool(patches, w, b, gamma, beta, eps=1e-5):
    """patches (B, 4, K, P) bf16 -> pooled activation (B, C, P) bf16."""
    B, _, K, P = patches.shape
    C = w.shape[0]
    return pl.pallas_call(
        functools.partial(_conv_gn_relu_pool_kernel, eps=eps),
        out_shape=jax.ShapeDtypeStruct((B, C, P), jnp.bfloat16),
        grid=(B,),
        in_specs=[
            pl.BlockSpec((None, 4, K, P), lambda bb: (bb, 0, 0, 0)),
            pl.BlockSpec((C, K), lambda bb: (0, 0)),
            pl.BlockSpec((C, 1), lambda bb: (0, 0)),
            pl.BlockSpec((C, 1), lambda bb: (0, 0)),
            pl.BlockSpec((C, 1), lambda bb: (0, 0)),
        ],
        out_specs=pl.BlockSpec((None, C, P), lambda bb: (bb, 0, 0)),
        compiler_params=pltpu.CompilerParams(dimension_semantics=("parallel",)),
    )(patches, w, b, gamma, beta)


def conv2_gn_pool_fc(patches, params, eps=1e-5):
    """patches (B, 4, 150, 25) bf16 -> logits (B, 10) f32 (conv2 stage + fc stack fused)."""
    B, _, K, P = patches.shape
    weight_args = (params["conv2_w"], params["conv2_b"], params["n2_g"], params["n2_b"],
                   params["fc1_w"], params["fc1_b"], params["fc2_w"], params["fc2_b"],
                   params["fc3_w"], params["fc3_b"])
    in_specs = [pl.BlockSpec((None, 4, K, P), lambda bb: (bb, 0, 0, 0))]
    in_specs += [pl.BlockSpec(a.shape, _const_map(a.ndim)) for a in weight_args]
    out = pl.pallas_call(
        functools.partial(_conv2_gn_pool_fc_kernel, eps=eps),
        out_shape=jax.ShapeDtypeStruct((B, 1, 10), jnp.float32),
        grid=(B,),
        in_specs=in_specs,
        out_specs=pl.BlockSpec((None, 1, 10), lambda bb: (bb, 0, 0)),
        compiler_params=pltpu.CompilerParams(dimension_semantics=("parallel",)),
    )(patches, *weight_args)
    return out[:, 0, :]


def fc3_only(x, params):
    """f(x, -1) = fc3(x): x (B, 84) -> (B, 10)."""
    B = x.shape[0]
    return pl.pallas_call(
        _fc3_kernel,
        out_shape=jax.ShapeDtypeStruct((B, 10), jnp.float32),
        grid=(1,),
        in_specs=[pl.BlockSpec((B, 84), lambda i: (0, 0)),
                  pl.BlockSpec((84, 10), lambda i: (0, 0)),
                  pl.BlockSpec((1, 10), lambda i: (0, 0))],
        out_specs=pl.BlockSpec((B, 10), lambda i: (0, 0)),
    )(x.astype(jnp.bfloat16), params["fc3_w"], params["fc3_b"])


# ----------------------------------------------------------------------------
# Layout glue: phase-grouped im2col (XLA-side, fused under jit)
# ----------------------------------------------------------------------------
def phase_im2col(x_nchw, kh, kw):
    """(B, C, H, W) -> (B, 4, C*kh*kw, PH*PW) patches grouped by 2x2-pool phase.

    patches[b, dr*2+dc, c*kh*kw + i*kw + j, ph*PW + pw] = x[b, c, 2*ph+dr+i, 2*pw+dc+j]
    """
    B, C, H, W = x_nchw.shape
    OH, OW = H - kh + 1, W - kw + 1
    PH, PW = OH // 2, OW // 2
    taps = []
    for i in range(kh):
        for j in range(kw):
            win = x_nchw[:, :, i:i + OH, j:j + OW].reshape(B, C, PH, 2, PW, 2)
            taps.append(win)
    t = jnp.stack(taps, axis=2)                     # (B, C, kh*kw, PH, 2, PW, 2)
    t = jnp.transpose(t, (0, 4, 6, 1, 2, 3, 5))     # (B, dr, dc, C, kh*kw, PH, PW)
    return t.reshape(B, 4, C * kh * kw, PH * PW)


# ----------------------------------------------------------------------------
# Parameters (PyTorch-style init, stored directly in the kernel GEMM layouts)
# ----------------------------------------------------------------------------
def init_params(key):
    ks = jax.random.split(key, 10)

    def unif(k, shape, fan_in):
        bound = 1.0 / (float(fan_in) ** 0.5)
        return jax.random.uniform(k, shape, jnp.float32, -bound, bound)

    w1 = unif(ks[0], (6, 3, 5, 5), 3 * 25)
    w2 = unif(ks[2], (16, 6, 5, 5), 6 * 25)
    fc1 = unif(ks[4], (400, 120), 400)
    return {
        # conv weights in (Cout, Cin*kh*kw) layout, bf16 for the MXU.
        "conv1_w": w1.reshape(6, -1).astype(jnp.bfloat16),
        "conv1_b": unif(ks[1], (6, 1), 3 * 25),
        "n1_g": jnp.ones((6, 1), jnp.float32), "n1_b": jnp.zeros((6, 1), jnp.float32),
        "conv2_w": w2.reshape(16, -1).astype(jnp.bfloat16),
        "conv2_b": unif(ks[3], (16, 1), 6 * 25),
        "n2_g": jnp.ones((16, 1), jnp.float32), "n2_b": jnp.zeros((16, 1), jnp.float32),
        # fc1 weight pre-reshaped to (C=16, P=25, 120): row index c*25+p == NCHW flatten,
        # so the x.view(-1, 400) transpose/flatten costs nothing at runtime.
        "fc1_w": fc1.reshape(16, 25, 120).astype(jnp.bfloat16),
        "fc1_b": unif(ks[5], (1, 120), 400),
        "fc2_w": unif(ks[6], (120, 84), 120).astype(jnp.bfloat16),
        "fc2_b": unif(ks[7], (1, 84), 120),
        "fc3_w": unif(ks[8], (84, 10), 84).astype(jnp.bfloat16),
        "fc3_b": unif(ks[9], (1, 10), 84),
    }


# ----------------------------------------------------------------------------
# Forward pass (SimpleCNN.f / forward)
# ----------------------------------------------------------------------------
@functools.partial(jax.jit, static_argnames=("start_layer_idx",))
def simple_cnn_forward(params, x, start_layer_idx=None):
    if start_layer_idx == -1:
        # f(x, -1) = fc3(x); x is already flat (B, 84).
        return fc3_only(x, params)

    B = x.shape[0]
    xb = x.astype(jnp.bfloat16)

    # conv1 (3 -> 6, 5x5) + GroupNorm(1,6) + ReLU + 2x2 maxpool, fully fused.
    p1 = phase_im2col(xb, 5, 5)                               # (B, 4, 75, 196)
    y1 = conv_gn_relu_pool(p1, params["conv1_w"], params["conv1_b"],
                           params["n1_g"], params["n1_b"])    # (B, 6, 196) bf16

    # conv2 (6 -> 16, 5x5) + GroupNorm(1,16) + ReLU + pool + fc1 + fc2 + fc3, fully fused.
    p2 = phase_im2col(y1.reshape(B, 6, 14, 14), 5, 5)         # (B, 4, 150, 25)
    return conv2_gn_pool_fc(p2, params)                       # (B, 10) f32


def simple_cnn(params, inputs, start_layer_idx=None):
    out = {"target": simple_cnn_forward(params, inputs["data"],
                                        start_layer_idx=start_layer_idx)}
    # TODO(synk): `loss_fn` is undefined in the reference module; only 'target' is produced.
    return out


if __name__ == "__main__":
    key = jax.random.PRNGKey(0)
    pkey, dkey = jax.random.split(key)
    params = init_params(pkey)

    # Architecture implies 32x32 spatial input (16*5*5 flatten): batch=2, channels=3.
    x = jax.random.normal(dkey, (2, 3, 32, 32), jnp.float32)

    out = simple_cnn(params, {"data": x})
    logits = jax.block_until_ready(out["target"])
    assert logits.shape == (2, 10) and logits.dtype == jnp.float32
    assert bool(jnp.all(jnp.isfinite(logits)))
    print("KERNEL_OK")
</pallas_src>

<mosaic_0001>
module attributes {stable_mosaic.version = 11 : i64} {
  func.func @_conv_gn_relu_pool_kernel(%arg0: i32, %arg1: memref<1x4x75x196xbf16, #tpu.memory_space<vmem>>, %arg2: memref<6x75xbf16, #tpu.memory_space<vmem>>, %arg3: memref<6x1xf32, #tpu.memory_space<vmem>>, %arg4: memref<6x1xf32, #tpu.memory_space<vmem>>, %arg5: memref<6x1xf32, #tpu.memory_space<vmem>>, %arg6: memref<1x6x196xbf16, #tpu.memory_space<vmem>>) attributes {dimension_semantics = [#tpu.dimension_semantics<parallel>], iteration_bounds = array<i64: 2>, scalar_prefetch = 0 : i64, scratch_operands = 0 : i64, tpu.core_type = #tpu.core_type<tc>, window_params = [{transform_indices = @transform_0, window_bounds = array<i64: 1, 4, 75, 196>}, {pipeline_mode = #tpu.pipeline_mode<synchronous>, transform_indices = @transform_1, window_bounds = array<i64: 6, 75>}, {pipeline_mode = #tpu.pipeline_mode<synchronous>, transform_indices = @transform_2, window_bounds = array<i64: 6, 1>}, {pipeline_mode = #tpu.pipeline_mode<synchronous>, transform_indices = @transform_3, window_bounds = array<i64: 6, 1>}, {pipeline_mode = #tpu.pipeline_mode<synchronous>, transform_indices = @transform_4, window_bounds = array<i64: 6, 1>}, {transform_indices = @transform_5, window_bounds = array<i64: 1, 6, 196>}]} {
    %c0 = arith.constant 0 : index
    %c0_0 = arith.constant 0 : index
    %0 = vector.load %arg2[%c0, %c0_0] : memref<6x75xbf16, #tpu.memory_space<vmem>>, vector<6x75xbf16>
    %c0_1 = arith.constant 0 : index
    %c0_2 = arith.constant 0 : index
    %1 = vector.load %arg3[%c0_1, %c0_2] : memref<6x1xf32, #tpu.memory_space<vmem>>, vector<6x1xf32>
    %c0_3 = arith.constant 0 : index
    %c0_4 = arith.constant 0 : index
    %c0_5 = arith.constant 0 : index
    %c0_6 = arith.constant 0 : index
    %2 = vector.load %arg1[%c0_3, %c0_4, %c0_5, %c0_6] : memref<1x4x75x196xbf16, #tpu.memory_space<vmem>>, vector<1x1x75x196xbf16>
    %3 = vector.shape_cast %2 : vector<1x1x75x196xbf16> to vector<75x196xbf16>
    %cst = arith.constant dense<0.000000e+00> : vector<6x196xf32>
    %4 = tpu.matmul %0, %3, %cst {dimension_numbers = #tpu.dot_dimension_numbers<[1], [0], [0], [1], [0, 0, 1, 1], [], []>} : vector<6x75xbf16>, vector<75x196xbf16>, vector<6x196xf32> -> vector<6x196xf32>
    %5 = vector.broadcast %1 : vector<6x1xf32> to vector<6x196xf32>
    %6 = arith.addf %4, %5 : vector<6x196xf32>
    %c0_7 = arith.constant 0 : index
    %c1 = arith.constant 1 : index
    %c0_8 = arith.constant 0 : index
    %c0_9 = arith.constant 0 : index
    %7 = vector.load %arg1[%c0_7, %c1, %c0_8, %c0_9] : memref<1x4x75x196xbf16, #tpu.memory_space<vmem>>, vector<1x1x75x196xbf16>
    %8 = vector.shape_cast %7 : vector<1x1x75x196xbf16> to vector<75x196xbf16>
    %cst_10 = arith.constant dense<0.000000e+00> : vector<6x196xf32>
    %9 = tpu.matmul %0, %8, %cst_10 {dimension_numbers = #tpu.dot_dimension_numbers<[1], [0], [0], [1], [0, 0, 1, 1], [], []>} : vector<6x75xbf16>, vector<75x196xbf16>, vector<6x196xf32> -> vector<6x196xf32>
    %10 = vector.broadcast %1 : vector<6x1xf32> to vector<6x196xf32>
    %11 = arith.addf %9, %10 : vector<6x196xf32>
    %c0_11 = arith.constant 0 : index
    %c2 = arith.constant 2 : index
    %c0_12 = arith.constant 0 : index
    %c0_13 = arith.constant 0 : index
    %12 = vector.load %arg1[%c0_11, %c2, %c0_12, %c0_13] : memref<1x4x75x196xbf16, #tpu.memory_space<vmem>>, vector<1x1x75x196xbf16>
    %13 = vector.shape_cast %12 : vector<1x1x75x196xbf16> to vector<75x196xbf16>
    %cst_14 = arith.constant dense<0.000000e+00> : vector<6x196xf32>
    %14 = tpu.matmul %0, %13, %cst_14 {dimension_numbers = #tpu.dot_dimension_numbers<[1], [0], [0], [1], [0, 0, 1, 1], [], []>} : vector<6x75xbf16>, vector<75x196xbf16>, vector<6x196xf32> -> vector<6x196xf32>
    %15 = vector.broadcast %1 : vector<6x1xf32> to vector<6x196xf32>
    %16 = arith.addf %14, %15 : vector<6x196xf32>
    %c0_15 = arith.constant 0 : index
    %c3 = arith.constant 3 : index
    %c0_16 = arith.constant 0 : index
    %c0_17 = arith.constant 0 : index
    %17 = vector.load %arg1[%c0_15, %c3, %c0_16, %c0_17] : memref<1x4x75x196xbf16, #tpu.memory_space<vmem>>, vector<1x1x75x196xbf16>
    %18 = vector.shape_cast %17 : vector<1x1x75x196xbf16> to vector<75x196xbf16>
    %cst_18 = arith.constant dense<0.000000e+00> : vector<6x196xf32>
    %19 = tpu.matmul %0, %18, %cst_18 {dimension_numbers = #tpu.dot_dimension_numbers<[1], [0], [0], [1], [0, 0, 1, 1], [], []>} : vector<6x75xbf16>, vector<75x196xbf16>, vector<6x196xf32> -> vector<6x196xf32>
    %20 = vector.broadcast %1 : vector<6x1xf32> to vector<6x196xf32>
    %21 = arith.addf %19, %20 : vector<6x196xf32>
    %c0_19 = arith.constant 0 : index
    %c0_20 = arith.constant 0 : index
    %22 = vector.load %arg4[%c0_19, %c0_20] : memref<6x1xf32, #tpu.memory_space<vmem>>, vector<6x1xf32>
    %c0_21 = arith.constant 0 : index
    %c0_22 = arith.constant 0 : index
    %23 = vector.load %arg5[%c0_21, %c0_22] : memref<6x1xf32, #tpu.memory_space<vmem>>, vector<6x1xf32>
    %24 = arith.addf %6, %11 : vector<6x196xf32>
    %25 = arith.addf %24, %16 : vector<6x196xf32>
    %26 = arith.addf %25, %21 : vector<6x196xf32>
    %cst_23 = arith.constant dense<0.000000e+00> : vector<6xf32>
    %27 = vector.multi_reduction <add>, %26, %cst_23 [1] : vector<6x196xf32> to vector<6xf32>
    %28 = vector.shape_cast %27 : vector<6xf32> to vector<6x1xf32>
    %cst_24 = arith.constant dense<0.000000e+00> : vector<1xf32>
    %29 = vector.multi_reduction <add>, %28, %cst_24 [0] : vector<6x1xf32> to vector<1xf32>
    %30 = vector.shape_cast %29 : vector<1xf32> to vector<1x1xf32>
    %cst_25 = arith.constant 4.704000e+03 : f32
    %31 = vector.broadcast %cst_25 : f32 to vector<1x1xf32>
    %32 = arith.divf %30, %31 : vector<1x1xf32>
    %33 = vector.broadcast %32 : vector<1x1xf32> to vector<6x196xf32>
    %34 = arith.subf %6, %33 : vector<6x196xf32>
    %35 = arith.mulf %34, %34 : vector<6x196xf32>
    %cst_26 = arith.constant dense<0.000000e+00> : vector<6xf32>
    %36 = vector.multi_reduction <add>, %35, %cst_26 [1] : vector<6x196xf32> to vector<6xf32>
    %37 = vector.shape_cast %36 : vector<6xf32> to vector<6x1xf32>
    %cst_27 = arith.constant dense<0.000000e+00> : vector<1xf32>
    %38 = vector.multi_reduction <add>, %37, %cst_27 [0] : vector<6x1xf32> to vector<1xf32>
    %39 = vector.shape_cast %38 : vector<1xf32> to vector<1x1xf32>
    %cst_28 = arith.constant 0.000000e+00 : f32
    %40 = vector.broadcast %cst_28 : f32 to vector<1x1xf32>
    %41 = arith.addf %40, %39 : vector<1x1xf32>
    %42 = vector.broadcast %32 : vector<1x1xf32> to vector<6x196xf32>
    %43 = arith.subf %11, %42 : vector<6x196xf32>
    %44 = arith.mulf %43, %43 : vector<6x196xf32>
    %cst_29 = arith.constant dense<0.000000e+00> : vector<6xf32>
    %45 = vector.multi_reduction <add>, %44, %cst_29 [1] : vector<6x196xf32> to vector<6xf32>
    %46 = vector.shape_cast %45 : vector<6xf32> to vector<6x1xf32>
    %cst_30 = arith.constant dense<0.000000e+00> : vector<1xf32>
    %47 = vector.multi_reduction <add>, %46, %cst_30 [0] : vector<6x1xf32> to vector<1xf32>
    %48 = vector.shape_cast %47 : vector<1xf32> to vector<1x1xf32>
    %49 = arith.addf %41, %48 : vector<1x1xf32>
    %50 = vector.broadcast %32 : vector<1x1xf32> to vector<6x196xf32>
    %51 = arith.subf %16, %50 : vector<6x196xf32>
    %52 = arith.mulf %51, %51 : vector<6x196xf32>
    %cst_31 = arith.constant dense<0.000000e+00> : vector<6xf32>
    %53 = vector.multi_reduction <add>, %52, %cst_31 [1] : vector<6x196xf32> to vector<6xf32>
    %54 = vector.shape_cast %53 : vector<6xf32> to vector<6x1xf32>
    %cst_32 = arith.constant dense<0.000000e+00> : vector<1xf32>
    %55 = vector.multi_reduction <add>, %54, %cst_32 [0] : vector<6x1xf32> to vector<1xf32>
    %56 = vector.shape_cast %55 : vector<1xf32> to vector<1x1xf32>
    %57 = arith.addf %49, %56 : vector<1x1xf32>
    %58 = vector.broadcast %32 : vector<1x1xf32> to vector<6x196xf32>
    %59 = arith.subf %21, %58 : vector<6x196xf32>
    %60 = arith.mulf %59, %59 : vector<6x196xf32>
    %cst_33 = arith.constant dense<0.000000e+00> : vector<6xf32>
    %61 = vector.multi_reduction <add>, %60, %cst_33 [1] : vector<6x196xf32> to vector<6xf32>
    %62 = vector.shape_cast %61 : vector<6xf32> to vector<6x1xf32>
    %cst_34 = arith.constant dense<0.000000e+00> : vector<1xf32>
    %63 = vector.multi_reduction <add>, %62, %cst_34 [0] : vector<6x1xf32> to vector<1xf32>
    %64 = vector.shape_cast %63 : vector<1xf32> to vector<1x1xf32>
    %65 = arith.addf %57, %64 : vector<1x1xf32>
    %cst_35 = arith.constant 4.704000e+03 : f32
    %66 = vector.broadcast %cst_35 : f32 to vector<1x1xf32>
    %67 = arith.divf %65, %66 : vector<1x1xf32>
    %cst_36 = arith.constant 9.99999974E-6 : f32
    %68 = vector.broadcast %cst_36 : f32 to vector<1x1xf32>
    %69 = arith.addf %67, %68 : vector<1x1xf32>
    %70 = math.rsqrt %69 : vector<1x1xf32>
    %71 = vector.broadcast %70 : vector<1x1xf32> to vector<6x1xf32>
    %72 = arith.mulf %22, %71 : vector<6x1xf32>
    %73 = vector.broadcast %32 : vector<1x1xf32> to vector<6x1xf32>
    %74 = arith.mulf %73, %72 : vector<6x1xf32>
    %75 = arith.subf %23, %74 : vector<6x1xf32>
    %76 = vector.broadcast %72 : vector<6x1xf32> to vector<6x196xf32>
    %77 = arith.mulf %6, %76 : vector<6x196xf32>
    %78 = vector.broadcast %75 : vector<6x1xf32> to vector<6x196xf32>
    %79 = arith.addf %77, %78 : vector<6x196xf32>
    %cst_37 = arith.constant 0.000000e+00 : f32
    %80 = vector.broadcast %cst_37 : f32 to vector<6x196xf32>
    %81 = arith.maximumf %79, %80 : vector<6x196xf32>
    %82 = vector.broadcast %72 : vector<6x1xf32> to vector<6x196xf32>
    %83 = arith.mulf %11, %82 : vector<6x196xf32>
    %84 = vector.broadcast %75 : vector<6x1xf32> to vector<6x196xf32>
    %85 = arith.addf %83, %84 : vector<6x196xf32>
    %cst_38 = arith.constant 0.000000e+00 : f32
    %86 = vector.broadcast %cst_38 : f32 to vector<6x196xf32>
    %87 = arith.maximumf %85, %86 : vector<6x196xf32>
    %88 = vector.broadcast %72 : vector<6x1xf32> to vector<6x196xf32>
    %89 = arith.mulf %16, %88 : vector<6x196xf32>
    %90 = vector.broadcast %75 : vector<6x1xf32> to vector<6x196xf32>
    %91 = arith.addf %89, %90 : vector<6x196xf32>
    %cst_39 = arith.constant 0.000000e+00 : f32
    %92 = vector.broadcast %cst_39 : f32 to vector<6x196xf32>
    %93 = arith.maximumf %91, %92 : vector<6x196xf32>
    %94 = vector.broadcast %72 : vector<6x1xf32> to vector<6x196xf32>
    %95 = arith.mulf %21, %94 : vector<6x196xf32>
    %96 = vector.broadcast %75 : vector<6x1xf32> to vector<6x196xf32>
    %97 = arith.addf %95, %96 : vector<6x196xf32>
    %cst_40 = arith.constant 0.000000e+00 : f32
    %98 = vector.broadcast %cst_40 : f32 to vector<6x196xf32>
    %99 = arith.maximumf %97, %98 : vector<6x196xf32>
    %100 = arith.maximumf %81, %87 : vector<6x196xf32>
    %101 = arith.maximumf %93, %99 : vector<6x196xf32>
    %102 = arith.maximumf %100, %101 : vector<6x196xf32>
    %103 = arith.truncf %102 : vector<6x196xf32> to vector<6x196xbf16>
    %c0_41 = arith.constant 0 : index
    %c0_42 = arith.constant 0 : index
    %c0_43 = arith.constant 0 : index
    %104 = vector.load %arg6[%c0_41, %c0_42, %c0_43] : memref<1x6x196xbf16, #tpu.memory_space<vmem>>, vector<1x6x196xbf16>
    %105 = vector.shape_cast %104 : vector<1x6x196xbf16> to vector<6x196xbf16>
    %106 = vector.shape_cast %103 : vector<6x196xbf16> to vector<1x6x196xbf16>
    tpu.vector_store %arg6[%c0_41, %c0_42, %c0_43], %106 {strides = array<i32>} : memref<1x6x196xbf16, #tpu.memory_space<vmem>>, vector<1x6x196xbf16>,
    return
  }
  func.func @transform_0(%arg0: i32) -> (i32, i32, i32, i32) {
    %c0_i32 = arith.constant 0 : i32
    %c0_i32_0 = arith.constant 0 : i32
    %c0_i32_1 = arith.constant 0 : i32
    %c0_i32_2 = arith.constant 0 : i32
    return %arg0, %c0_i32, %c0_i32_0, %c0_i32_1 : i32, i32, i32, i32
  }
  func.func @transform_1(%arg0: i32) -> (i32, i32) {
    %c0_i32 = arith.constant 0 : i32
    %c0_i32_0 = arith.constant 0 : i32
    %c0_i32_1 = arith.constant 0 : i32
    return %c0_i32, %c0_i32_0 : i32, i32
  }
  func.func @transform_2(%arg0: i32) -> (i32, i32) {
    %c0_i32 = arith.constant 0 : i32
    %c0_i32_0 = arith.constant 0 : i32
    %c0_i32_1 = arith.constant 0 : i32
    return %c0_i32, %c0_i32_0 : i32, i32
  }
  func.func @transform_3(%arg0: i32) -> (i32, i32) {
    %c0_i32 = arith.constant 0 : i32
    %c0_i32_0 = arith.constant 0 : i32
    %c0_i32_1 = arith.constant 0 : i32
    return %c0_i32, %c0_i32_0 : i32, i32
  }
  func.func @transform_4(%arg0: i32) -> (i32, i32) {
    %c0_i32 = arith.constant 0 : i32
    %c0_i32_0 = arith.constant 0 : i32
    %c0_i32_1 = arith.constant 0 : i32
    return %c0_i32, %c0_i32_0 : i32, i32
  }
  func.func @transform_5(%arg0: i32) -> (i32, i32, i32) {
    %c0_i32 = arith.constant 0 : i32
    %c0_i32_0 = arith.constant 0 : i32
    %c0_i32_1 = arith.constant 0 : i32
    return %arg0, %c0_i32, %c0_i32_0 : i32, i32, i32
  }
}

module attributes {stable_mosaic.version = 11 : i64} {
  func.func @_conv2_gn_pool_fc_kernel(%arg0: i32, %arg1: memref<1x4x150x25xbf16, #tpu.memory_space<vmem>>, %arg2: memref<16x150xbf16, #tpu.memory_space<vmem>>, %arg3: memref<16x1xf32, #tpu.memory_space<vmem>>, %arg4: memref<16x1xf32, #tpu.memory_space<vmem>>, %arg5: memref<16x1xf32, #tpu.memory_space<vmem>>, %arg6: memref<16x25x120xbf16, #tpu.memory_space<vmem>>, %arg7: memref<1x120xf32, #tpu.memory_space<vmem>>, %arg8: memref<120x84xbf16, #tpu.memory_space<vmem>>, %arg9: memref<1x84xf32, #tpu.memory_space<vmem>>, %arg10: memref<84x10xbf16, #tpu.memory_space<vmem>>, %arg11: memref<1x10xf32, #tpu.memory_space<vmem>>, %arg12: memref<1x1x10xf32, #tpu.memory_space<vmem>>) attributes {dimension_semantics = [#tpu.dimension_semantics<parallel>], iteration_bounds = array<i64: 2>, scalar_prefetch = 0 : i64, scratch_operands = 0 : i64, tpu.core_type = #tpu.core_type<tc>, window_params = [{transform_indices = @transform_0, window_bounds = array<i64: 1, 4, 150, 25>}, {pipeline_mode = #tpu.pipeline_mode<synchronous>, transform_indices = @transform_1, window_bounds = array<i64: 16, 150>}, {pipeline_mode = #tpu.pipeline_mode<synchronous>, transform_indices = @transform_2, window_bounds = array<i64: 16, 1>}, {pipeline_mode = #tpu.pipeline_mode<synchronous>, transform_indices = @transform_3, window_bounds = array<i64: 16, 1>}, {pipeline_mode = #tpu.pipeline_mode<synchronous>, transform_indices = @transform_4, window_bounds = array<i64: 16, 1>}, {pipeline_mode = #tpu.pipeline_mode<synchronous>, transform_indices = @transform_5, window_bounds = array<i64: 16, 25, 120>}, {pipeline_mode = #tpu.pipeline_mode<synchronous>, transform_indices = @transform_6, window_bounds = array<i64: 1, 120>}, {pipeline_mode = #tpu.pipeline_mode<synchronous>, transform_indices = @transform_7, window_bounds = array<i64: 120, 84>}, {pipeline_mode = #tpu.pipeline_mode<synchronous>, transform_indices = @transform_8, window_bounds = array<i64: 1, 84>}, {pipeline_mode = #tpu.pipeline_mode<synchronous>, transform_indices = @transform_9, window_bounds = array<i64: 84, 10>}, {pipeline_mode = #tpu.pipeline_mode<synchronous>, transform_indices = @transform_10, window_bounds = array<i64: 1, 10>}, {transform_indices = @transform_11, window_bounds = array<i64: 1, 1, 10>}]} {
    %c0 = arith.constant 0 : index
    %c0_0 = arith.constant 0 : index
    %0 = vector.load %arg2[%c0, %c0_0] : memref<16x150xbf16, #tpu.memory_space<vmem>>, vector<16x150xbf16>
    %c0_1 = arith.constant 0 : index
    %c0_2 = arith.constant 0 : index
    %1 = vector.load %arg3[%c0_1, %c0_2] : memref<16x1xf32, #tpu.memory_space<vmem>>, vector<16x1xf32>
    %c0_3 = arith.constant 0 : index
    %c0_4 = arith.constant 0 : index
    %c0_5 = arith.constant 0 : index
    %c0_6 = arith.constant 0 : index
    %2 = vector.load %arg1[%c0_3, %c0_4, %c0_5, %c0_6] : memref<1x4x150x25xbf16, #tpu.memory_space<vmem>>, vector<1x1x150x25xbf16>
    %3 = vector.shape_cast %2 : vector<1x1x150x25xbf16> to vector<150x25xbf16>
    %cst = arith.constant dense<0.000000e+00> : vector<16x25xf32>
    %4 = tpu.matmul %0, %3, %cst {dimension_numbers = #tpu.dot_dimension_numbers<[1], [0], [0], [1], [0, 0, 1, 1], [], []>} : vector<16x150xbf16>, vector<150x25xbf16>, vector<16x25xf32> -> vector<16x25xf32>
    %5 = vector.broadcast %1 : vector<16x1xf32> to vector<16x25xf32>
    %6 = arith.addf %4, %5 : vector<16x25xf32>
    %c0_7 = arith.constant 0 : index
    %c1 = arith.constant 1 : index
    %c0_8 = arith.constant 0 : index
    %c0_9 = arith.constant 0 : index
    %7 = vector.load %arg1[%c0_7, %c1, %c0_8, %c0_9] : memref<1x4x150x25xbf16, #tpu.memory_space<vmem>>, vector<1x1x150x25xbf16>
    %8 = vector.shape_cast %7 : vector<1x1x150x25xbf16> to vector<150x25xbf16>
    %cst_10 = arith.constant dense<0.000000e+00> : vector<16x25xf32>
    %9 = tpu.matmul %0, %8, %cst_10 {dimension_numbers = #tpu.dot_dimension_numbers<[1], [0], [0], [1], [0, 0, 1, 1], [], []>} : vector<16x150xbf16>, vector<150x25xbf16>, vector<16x25xf32> -> vector<16x25xf32>
    %10 = vector.broadcast %1 : vector<16x1xf32> to vector<16x25xf32>
    %11 = arith.addf %9, %10 : vector<16x25xf32>
    %c0_11 = arith.constant 0 : index
    %c2 = arith.constant 2 : index
    %c0_12 = arith.constant 0 : index
    %c0_13 = arith.constant 0 : index
    %12 = vector.load %arg1[%c0_11, %c2, %c0_12, %c0_13] : memref<1x4x150x25xbf16, #tpu.memory_space<vmem>>, vector<1x1x150x25xbf16>
    %13 = vector.shape_cast %12 : vector<1x1x150x25xbf16> to vector<150x25xbf16>
    %cst_14 = arith.constant dense<0.000000e+00> : vector<16x25xf32>
    %14 = tpu.matmul %0, %13, %cst_14 {dimension_numbers = #tpu.dot_dimension_numbers<[1], [0], [0], [1], [0, 0, 1, 1], [], []>} : vector<16x150xbf16>, vector<150x25xbf16>, vector<16x25xf32> -> vector<16x25xf32>
    %15 = vector.broadcast %1 : vector<16x1xf32> to vector<16x25xf32>
    %16 = arith.addf %14, %15 : vector<16x25xf32>
    %c0_15 = arith.constant 0 : index
    %c3 = arith.constant 3 : index
    %c0_16 = arith.constant 0 : index
    %c0_17 = arith.constant 0 : index
    %17 = vector.load %arg1[%c0_15, %c3, %c0_16, %c0_17] : memref<1x4x150x25xbf16, #tpu.memory_space<vmem>>, vector<1x1x150x25xbf16>
    %18 = vector.shape_cast %17 : vector<1x1x150x25xbf16> to vector<150x25xbf16>
    %cst_18 = arith.constant dense<0.000000e+00> : vector<16x25xf32>
    %19 = tpu.matmul %0, %18, %cst_18 {dimension_numbers = #tpu.dot_dimension_numbers<[1], [0], [0], [1], [0, 0, 1, 1], [], []>} : vector<16x150xbf16>, vector<150x25xbf16>, vector<16x25xf32> -> vector<16x25xf32>
    %20 = vector.broadcast %1 : vector<16x1xf32> to vector<16x25xf32>
    %21 = arith.addf %19, %20 : vector<16x25xf32>
    %c0_19 = arith.constant 0 : index
    %c0_20 = arith.constant 0 : index
    %22 = vector.load %arg4[%c0_19, %c0_20] : memref<16x1xf32, #tpu.memory_space<vmem>>, vector<16x1xf32>
    %c0_21 = arith.constant 0 : index
    %c0_22 = arith.constant 0 : index
    %23 = vector.load %arg5[%c0_21, %c0_22] : memref<16x1xf32, #tpu.memory_space<vmem>>, vector<16x1xf32>
    %24 = arith.addf %6, %11 : vector<16x25xf32>
    %25 = arith.addf %24, %16 : vector<16x25xf32>
    %26 = arith.addf %25, %21 : vector<16x25xf32>
    %cst_23 = arith.constant dense<0.000000e+00> : vector<16xf32>
    %27 = vector.multi_reduction <add>, %26, %cst_23 [1] : vector<16x25xf32> to vector<16xf32>
    %28 = vector.shape_cast %27 : vector<16xf32> to vector<16x1xf32>
    %cst_24 = arith.constant dense<0.000000e+00> : vector<1xf32>
    %29 = vector.multi_reduction <add>, %28, %cst_24 [0] : vector<16x1xf32> to vector<1xf32>
    %30 = vector.shape_cast %29 : vector<1xf32> to vector<1x1xf32>
    %cst_25 = arith.constant 1.600000e+03 : f32
    %31 = vector.broadcast %cst_25 : f32 to vector<1x1xf32>
    %32 = arith.divf %30, %31 : vector<1x1xf32>
    %33 = vector.broadcast %32 : vector<1x1xf32> to vector<16x25xf32>
    %34 = arith.subf %6, %33 : vector<16x25xf32>
    %35 = arith.mulf %34, %34 : vector<16x25xf32>
    %cst_26 = arith.constant dense<0.000000e+00> : vector<16xf32>
    %36 = vector.multi_reduction <add>, %35, %cst_26 [1] : vector<16x25xf32> to vector<16xf32>
    %37 = vector.shape_cast %36 : vector<16xf32> to vector<16x1xf32>
    %cst_27 = arith.constant dense<0.000000e+00> : vector<1xf32>
    %38 = vector.multi_reduction <add>, %37, %cst_27 [0] : vector<16x1xf32> to vector<1xf32>
    %39 = vector.shape_cast %38 : vector<1xf32> to vector<1x1xf32>
    %cst_28 = arith.constant 0.000000e+00 : f32
    %40 = vector.broadcast %cst_28 : f32 to vector<1x1xf32>
    %41 = arith.addf %40, %39 : vector<1x1xf32>
    %42 = vector.broadcast %32 : vector<1x1xf32> to vector<16x25xf32>
    %43 = arith.subf %11, %42 : vector<16x25xf32>
    %44 = arith.mulf %43, %43 : vector<16x25xf32>
    %cst_29 = arith.constant dense<0.000000e+00> : vector<16xf32>
    %45 = vector.multi_reduction <add>, %44, %cst_29 [1] : vector<16x25xf32> to vector<16xf32>
    %46 = vector.shape_cast %45 : vector<16xf32> to vector<16x1xf32>
    %cst_30 = arith.constant dense<0.000000e+00> : vector<1xf32>
    %47 = vector.multi_reduction <add>, %46, %cst_30 [0] : vector<16x1xf32> to vector<1xf32>
    %48 = vector.shape_cast %47 : vector<1xf32> to vector<1x1xf32>
    %49 = arith.addf %41, %48 : vector<1x1xf32>
    %50 = vector.broadcast %32 : vector<1x1xf32> to vector<16x25xf32>
    %51 = arith.subf %16, %50 : vector<16x25xf32>
    %52 = arith.mulf %51, %51 : vector<16x25xf32>
    %cst_31 = arith.constant dense<0.000000e+00> : vector<16xf32>
    %53 = vector.multi_reduction <add>, %52, %cst_31 [1] : vector<16x25xf32> to vector<16xf32>
    %54 = vector.shape_cast %53 : vector<16xf32> to vector<16x1xf32>
    %cst_32 = arith.constant dense<0.000000e+00> : vector<1xf32>
    %55 = vector.multi_reduction <add>, %54, %cst_32 [0] : vector<16x1xf32> to vector<1xf32>
    %56 = vector.shape_cast %55 : vector<1xf32> to vector<1x1xf32>
    %57 = arith.addf %49, %56 : vector<1x1xf32>
    %58 = vector.broadcast %32 : vector<1x1xf32> to vector<16x25xf32>
    %59 = arith.subf %21, %58 : vector<16x25xf32>
    %60 = arith.mulf %59, %59 : vector<16x25xf32>
    %cst_33 = arith.constant dense<0.000000e+00> : vector<16xf32>
    %61 = vector.multi_reduction <add>, %60, %cst_33 [1] : vector<16x25xf32> to vector<16xf32>
    %62 = vector.shape_cast %61 : vector<16xf32> to vector<16x1xf32>
    %cst_34 = arith.constant dense<0.000000e+00> : vector<1xf32>
    %63 = vector.multi_reduction <add>, %62, %cst_34 [0] : vector<16x1xf32> to vector<1xf32>
    %64 = vector.shape_cast %63 : vector<1xf32> to vector<1x1xf32>
    %65 = arith.addf %57, %64 : vector<1x1xf32>
    %cst_35 = arith.constant 1.600000e+03 : f32
    %66 = vector.broadcast %cst_35 : f32 to vector<1x1xf32>
    %67 = arith.divf %65, %66 : vector<1x1xf32>
    %cst_36 = arith.constant 9.99999974E-6 : f32
    %68 = vector.broadcast %cst_36 : f32 to vector<1x1xf32>
    %69 = arith.addf %67, %68 : vector<1x1xf32>
    %70 = math.rsqrt %69 : vector<1x1xf32>
    %71 = vector.broadcast %70 : vector<1x1xf32> to vector<16x1xf32>
    %72 = arith.mulf %22, %71 : vector<16x1xf32>
    %73 = vector.broadcast %32 : vector<1x1xf32> to vector<16x1xf32>
    %74 = arith.mulf %73, %72 : vector<16x1xf32>
    %75 = arith.subf %23, %74 : vector<16x1xf32>
    %76 = vector.broadcast %72 : vector<16x1xf32> to vector<16x25xf32>
    %77 = arith.mulf %6, %76 : vector<16x25xf32>
    %78 = vector.broadcast %75 : vector<16x1xf32> to vector<16x25xf32>
    %79 = arith.addf %77, %78 : vector<16x25xf32>
    %cst_37 = arith.constant 0.000000e+00 : f32
    %80 = vector.broadcast %cst_37 : f32 to vector<16x25xf32>
    %81 = arith.maximumf %79, %80 : vector<16x25xf32>
    %82 = vector.broadcast %72 : vector<16x1xf32> to vector<16x25xf32>
    %83 = arith.mulf %11, %82 : vector<16x25xf32>
    %84 = vector.broadcast %75 : vector<16x1xf32> to vector<16x25xf32>
    %85 = arith.addf %83, %84 : vector<16x25xf32>
    %cst_38 = arith.constant 0.000000e+00 : f32
    %86 = vector.broadcast %cst_38 : f32 to vector<16x25xf32>
    %87 = arith.maximumf %85, %86 : vector<16x25xf32>
    %88 = vector.broadcast %72 : vector<16x1xf32> to vector<16x25xf32>
    %89 = arith.mulf %16, %88 : vector<16x25xf32>
    %90 = vector.broadcast %75 : vector<16x1xf32> to vector<16x25xf32>
    %91 = arith.addf %89, %90 : vector<16x25xf32>
    %cst_39 = arith.constant 0.000000e+00 : f32
    %92 = vector.broadcast %cst_39 : f32 to vector<16x25xf32>
    %93 = arith.maximumf %91, %92 : vector<16x25xf32>
    %94 = vector.broadcast %72 : vector<16x1xf32> to vector<16x25xf32>
    %95 = arith.mulf %21, %94 : vector<16x25xf32>
    %96 = vector.broadcast %75 : vector<16x1xf32> to vector<16x25xf32>
    %97 = arith.addf %95, %96 : vector<16x25xf32>
    %cst_40 = arith.constant 0.000000e+00 : f32
    %98 = vector.broadcast %cst_40 : f32 to vector<16x25xf32>
    %99 = arith.maximumf %97, %98 : vector<16x25xf32>
    %100 = arith.maximumf %81, %87 : vector<16x25xf32>
    %101 = arith.maximumf %93, %99 : vector<16x25xf32>
    %102 = arith.maximumf %100, %101 : vector<16x25xf32>
    %103 = arith.truncf %102 : vector<16x25xf32> to vector<16x25xbf16>
    %c0_41 = arith.constant 0 : index
    %c0_42 = arith.constant 0 : index
    %104 = vector.load %arg7[%c0_41, %c0_42] : memref<1x120xf32, #tpu.memory_space<vmem>>, vector<1x120xf32>
    %105 = vector.extract_strided_slice %103 {offsets = [0, 0], sizes = [1, 25], strides = [1, 1]} : vector<16x25xbf16> to vector<1x25xbf16>
    %c0_43 = arith.constant 0 : index
    %c0_44 = arith.constant 0 : index
    %c0_45 = arith.constant 0 : index
    %106 = vector.load %arg6[%c0_43, %c0_44, %c0_45] : memref<16x25x120xbf16, #tpu.memory_space<vmem>>, vector<1x25x120xbf16>
    %107 = vector.shape_cast %106 : vector<1x25x120xbf16> to vector<25x120xbf16>
    %cst_46 = arith.constant dense<0.000000e+00> : vector<1x120xf32>
    %108 = tpu.matmul %105, %107, %cst_46 {dimension_numbers = #tpu.dot_dimension_numbers<[1], [0], [0], [1], [0, 0, 1, 1], [], []>} : vector<1x25xbf16>, vector<25x120xbf16>, vector<1x120xf32> -> vector<1x120xf32>
    %109 = arith.addf %104, %108 : vector<1x120xf32>
    %110 = vector.extract_strided_slice %103 {offsets = [1, 0], sizes = [1, 25], strides = [1, 1]} : vector<16x25xbf16> to vector<1x25xbf16>
    %c1_47 = arith.constant 1 : index
    %c0_48 = arith.constant 0 : index
    %c0_49 = arith.constant 0 : index
    %111 = vector.load %arg6[%c1_47, %c0_48, %c0_49] : memref<16x25x120xbf16, #tpu.memory_space<vmem>>, vector<1x25x120xbf16>
    %112 = vector.shape_cast %111 : vector<1x25x120xbf16> to vector<25x120xbf16>
    %cst_50 = arith.constant dense<0.000000e+00> : vector<1x120xf32>
    %113 = tpu.matmul %110, %112, %cst_50 {dimension_numbers = #tpu.dot_dimension_numbers<[1], [0], [0], [1], [0, 0, 1, 1], [], []>} : vector<1x25xbf16>, vector<25x120xbf16>, vector<1x120xf32> -> vector<1x120xf32>
    %114 = arith.addf %109, %113 : vector<1x120xf32>
    %115 = vector.extract_strided_slice %103 {offsets = [2, 0], sizes = [1, 25], strides = [1, 1]} : vector<16x25xbf16> to vector<1x25xbf16>
    %c2_51 = arith.constant 2 : index
    %c0_52 = arith.constant 0 : index
    %c0_53 = arith.constant 0 : index
    %116 = vector.load %arg6[%c2_51, %c0_52, %c0_53] : memref<16x25x120xbf16, #tpu.memory_space<vmem>>, vector<1x25x120xbf16>
    %117 = vector.shape_cast %116 : vector<1x25x120xbf16> to vector<25x120xbf16>
    %cst_54 = arith.constant dense<0.000000e+00> : vector<1x120xf32>
    %118 = tpu.matmul %115, %117, %cst_54 {dimension_numbers = #tpu.dot_dimension_numbers<[1], [0], [0], [1], [0, 0, 1, 1], [], []>} : vector<1x25xbf16>, vector<25x120xbf16>, vector<1x120xf32> -> vector<1x120xf32>
    %119 = arith.addf %114, %118 : vector<1x120xf32>
    %120 = vector.extract_strided_slice %103 {offsets = [3, 0], sizes = [1, 25], strides = [1, 1]} : vector<16x25xbf16> to vector<1x25xbf16>
    %c3_55 = arith.constant 3 : index
    %c0_56 = arith.constant 0 : index
    %c0_57 = arith.constant 0 : index
    %121 = vector.load %arg6[%c3_55, %c0_56, %c0_57] : memref<16x25x120xbf16, #tpu.memory_space<vmem>>, vector<1x25x120xbf16>
    %122 = vector.shape_cast %121 : vector<1x25x120xbf16> to vector<25x120xbf16>
    %cst_58 = arith.constant dense<0.000000e+00> : vector<1x120xf32>
    %123 = tpu.matmul %120, %122, %cst_58 {dimension_numbers = #tpu.dot_dimension_numbers<[1], [0], [0], [1], [0, 0, 1, 1], [], []>} : vector<1x25xbf16>, vector<25x120xbf16>, vector<1x120xf32> -> vector<1x120xf32>
    %124 = arith.addf %119, %123 : vector<1x120xf32>
    %125 = vector.extract_strided_slice %103 {offsets = [4, 0], sizes = [1, 25], strides = [1, 1]} : vector<16x25xbf16> to vector<1x25xbf16>
    %c4 = arith.constant 4 : index
    %c0_59 = arith.constant 0 : index
    %c0_60 = arith.constant 0 : index
    %126 = vector.load %arg6[%c4, %c0_59, %c0_60] : memref<16x25x120xbf16, #tpu.memory_space<vmem>>, vector<1x25x120xbf16>
    %127 = vector.shape_cast %126 : vector<1x25x120xbf16> to vector<25x120xbf16>
    %cst_61 = arith.constant dense<0.000000e+00> : vector<1x120xf32>
    %128 = tpu.matmul %125, %127, %cst_61 {dimension_numbers = #tpu.dot_dimension_numbers<[1], [0], [0], [1], [0, 0, 1, 1], [], []>} : vector<1x25xbf16>, vector<25x120xbf16>, vector<1x120xf32> -> vector<1x120xf32>
    %129 = arith.addf %124, %128 : vector<1x120xf32>
    %130 = vector.extract_strided_slice %103 {offsets = [5, 0], sizes = [1, 25], strides = [1, 1]} : vector<16x25xbf16> to vector<1x25xbf16>
    %c5 = arith.constant 5 : index
    %c0_62 = arith.constant 0 : index
    %c0_63 = arith.constant 0 : index
    %131 = vector.load %arg6[%c5, %c0_62, %c0_63] : memref<16x25x120xbf16, #tpu.memory_space<vmem>>, vector<1x25x120xbf16>
    %132 = vector.shape_cast %131 : vector<1x25x120xbf16> to vector<25x120xbf16>
    %cst_64 = arith.constant dense<0.000000e+00> : vector<1x120xf32>
    %133 = tpu.matmul %130, %132, %cst_64 {dimension_numbers = #tpu.dot_dimension_numbers<[1], [0], [0], [1], [0, 0, 1, 1], [], []>} : vector<1x25xbf16>, vector<25x120xbf16>, vector<1x120xf32> -> vector<1x120xf32>
    %134 = arith.addf %129, %133 : vector<1x120xf32>
    %135 = vector.extract_strided_slice %103 {offsets = [6, 0], sizes = [1, 25], strides = [1, 1]} : vector<16x25xbf16> to vector<1x25xbf16>
    %c6 = arith.constant 6 : index
    %c0_65 = arith.constant 0 : index
    %c0_66 = arith.constant 0 : index
    %136 = vector.load %arg6[%c6, %c0_65, %c0_66] : memref<16x25x120xbf16, #tpu.memory_space<vmem>>, vector<1x25x120xbf16>
    %137 = vector.shape_cast %136 : vector<1x25x120xbf16> to vector<25x120xbf16>
    %cst_67 = arith.constant dense<0.000000e+00> : vector<1x120xf32>
    %138 = tpu.matmul %135, %137, %cst_67 {dimension_numbers = #tpu.dot_dimension_numbers<[1], [0], [0], [1], [0, 0, 1, 1], [], []>} : vector<1x25xbf16>, vector<25x120xbf16>, vector<1x120xf32> -> vector<1x120xf32>
    %139 = arith.addf %134, %138 : vector<1x120xf32>
    %140 = vector.extract_strided_slice %103 {offsets = [7, 0], sizes = [1, 25], strides = [1, 1]} : vector<16x25xbf16> to vector<1x25xbf16>
    %c7 = arith.constant 7 : index
    %c0_68 = arith.constant 0 : index
    %c0_69 = arith.constant 0 : index
    %141 = vector.load %arg6[%c7, %c0_68, %c0_69] : memref<16x25x120xbf16, #tpu.memory_space<vmem>>, vector<1x25x120xbf16>
    %142 = vector.shape_cast %141 : vector<1x25x120xbf16> to vector<25x120xbf16>
    %cst_70 = arith.constant dense<0.000000e+00> : vector<1x120xf32>
    %143 = tpu.matmul %140, %142, %cst_70 {dimension_numbers = #tpu.dot_dimension_numbers<[1], [0], [0], [1], [0, 0, 1, 1], [], []>} : vector<1x25xbf16>, vector<25x120xbf16>, vector<1x120xf32> -> vector<1x120xf32>
    %144 = arith.addf %139, %143 : vector<1x120xf32>
    %145 = vector.extract_strided_slice %103 {offsets = [8, 0], sizes = [1, 25], strides = [1, 1]} : vector<16x25xbf16> to vector<1x25xbf16>
    %c8 = arith.constant 8 : index
    %c0_71 = arith.constant 0 : index
    %c0_72 = arith.constant 0 : index
    %146 = vector.load %arg6[%c8, %c0_71, %c0_72] : memref<16x25x120xbf16, #tpu.memory_space<vmem>>, vector<1x25x120xbf16>
    %147 = vector.shape_cast %146 : vector<1x25x120xbf16> to vector<25x120xbf16>
    %cst_73 = arith.constant dense<0.000000e+00> : vector<1x120xf32>
    %148 = tpu.matmul %145, %147, %cst_73 {dimension_numbers = #tpu.dot_dimension_numbers<[1], [0], [0], [1], [0, 0, 1, 1], [], []>} : vector<1x25xbf16>, vector<25x120xbf16>, vector<1x120xf32> -> vector<1x120xf32>
    %149 = arith.addf %144, %148 : vector<1x120xf32>
    %150 = vector.extract_strided_slice %103 {offsets = [9, 0], sizes = [1, 25], strides = [1, 1]} : vector<16x25xbf16> to vector<1x25xbf16>
    %c9 = arith.constant 9 : index
    %c0_74 = arith.constant 0 : index
    %c0_75 = arith.constant 0 : index
    %151 = vector.load %arg6[%c9, %c0_74, %c0_75] : memref<16x25x120xbf16, #tpu.memory_space<vmem>>, vector<1x25x120xbf16>
    %152 = vector.shape_cast %151 : vector<1x25x120xbf16> to vector<25x120xbf16>
    %cst_76 = arith.constant dense<0.000000e+00> : vector<1x120xf32>
    %153 = tpu.matmul %150, %152, %cst_76 {dimension_numbers = #tpu.dot_dimension_numbers<[1], [0], [0], [1], [0, 0, 1, 1], [], []>} : vector<1x25xbf16>, vector<25x120xbf16>, vector<1x120xf32> -> vector<1x120xf32>
    %154 = arith.addf %149, %153 : vector<1x120xf32>
    %155 = vector.extract_strided_slice %103 {offsets = [10, 0], sizes = [1, 25], strides = [1, 1]} : vector<16x25xbf16> to vector<1x25xbf16>
    %c10 = arith.constant 10 : index
    %c0_77 = arith.constant 0 : index
    %c0_78 = arith.constant 0 : index
    %156 = vector.load %arg6[%c10, %c0_77, %c0_78] : memref<16x25x120xbf16, #tpu.memory_space<vmem>>, vector<1x25x120xbf16>
    %157 = vector.shape_cast %156 : vector<1x25x120xbf16> to vector<25x120xbf16>
    %cst_79 = arith.constant dense<0.000000e+00> : vector<1x120xf32>
    %158 = tpu.matmul %155, %157, %cst_79 {dimension_numbers = #tpu.dot_dimension_numbers<[1], [0], [0], [1], [0, 0, 1, 1], [], []>} : vector<1x25xbf16>, vector<25x120xbf16>, vector<1x120xf32> -> vector<1x120xf32>
    %159 = arith.addf %154, %158 : vector<1x120xf32>
    %160 = vector.extract_strided_slice %103 {offsets = [11, 0], sizes = [1, 25], strides = [1, 1]} : vector<16x25xbf16> to vector<1x25xbf16>
    %c11 = arith.constant 11 : index
    %c0_80 = arith.constant 0 : index
    %c0_81 = arith.constant 0 : index
    %161 = vector.load %arg6[%c11, %c0_80, %c0_81] : memref<16x25x120xbf16, #tpu.memory_space<vmem>>, vector<1x25x120xbf16>
    %162 = vector.shape_cast %161 : vector<1x25x120xbf16> to vector<25x120xbf16>
    %cst_82 = arith.constant dense<0.000000e+00> : vector<1x120xf32>
    %163 = tpu.matmul %160, %162, %cst_82 {dimension_numbers = #tpu.dot_dimension_numbers<[1], [0], [0], [1], [0, 0, 1, 1], [], []>} : vector<1x25xbf16>, vector<25x120xbf16>, vector<1x120xf32> -> vector<1x120xf32>
    %164 = arith.addf %159, %163 : vector<1x120xf32>
    %165 = vector.extract_strided_slice %103 {offsets = [12, 0], sizes = [1, 25], strides = [1, 1]} : vector<16x25xbf16> to vector<1x25xbf16>
    %c12 = arith.constant 12 : index
    %c0_83 = arith.constant 0 : index
    %c0_84 = arith.constant 0 : index
    %166 = vector.load %arg6[%c12, %c0_83, %c0_84] : memref<16x25x120xbf16, #tpu.memory_space<vmem>>, vector<1x25x120xbf16>
    %167 = vector.shape_cast %166 : vector<1x25x120xbf16> to vector<25x120xbf16>
    %cst_85 = arith.constant dense<0.000000e+00> : vector<1x120xf32>
    %168 = tpu.matmul %165, %167, %cst_85 {dimension_numbers = #tpu.dot_dimension_numbers<[1], [0], [0], [1], [0, 0, 1, 1], [], []>} : vector<1x25xbf16>, vector<25x120xbf16>, vector<1x120xf32> -> vector<1x120xf32>
    %169 = arith.addf %164, %168 : vector<1x120xf32>
    %170 = vector.extract_strided_slice %103 {offsets = [13, 0], sizes = [1, 25], strides = [1, 1]} : vector<16x25xbf16> to vector<1x25xbf16>
    %c13 = arith.constant 13 : index
    %c0_86 = arith.constant 0 : index
    %c0_87 = arith.constant 0 : index
    %171 = vector.load %arg6[%c13, %c0_86, %c0_87] : memref<16x25x120xbf16, #tpu.memory_space<vmem>>, vector<1x25x120xbf16>
    %172 = vector.shape_cast %171 : vector<1x25x120xbf16> to vector<25x120xbf16>
    %cst_88 = arith.constant dense<0.000000e+00> : vector<1x120xf32>
    %173 = tpu.matmul %170, %172, %cst_88 {dimension_numbers = #tpu.dot_dimension_numbers<[1], [0], [0], [1], [0, 0, 1, 1], [], []>} : vector<1x25xbf16>, vector<25x120xbf16>, vector<1x120xf32> -> vector<1x120xf32>
    %174 = arith.addf %169, %173 : vector<1x120xf32>
    %175 = vector.extract_strided_slice %103 {offsets = [14, 0], sizes = [1, 25], strides = [1, 1]} : vector<16x25xbf16> to vector<1x25xbf16>
    %c14 = arith.constant 14 : index
    %c0_89 = arith.constant 0 : index
    %c0_90 = arith.constant 0 : index
    %176 = vector.load %arg6[%c14, %c0_89, %c0_90] : memref<16x25x120xbf16, #tpu.memory_space<vmem>>, vector<1x25x120xbf16>
    %177 = vector.shape_cast %176 : vector<1x25x120xbf16> to vector<25x120xbf16>
    %cst_91 = arith.constant dense<0.000000e+00> : vector<1x120xf32>
    %178 = tpu.matmul %175, %177, %cst_91 {dimension_numbers = #tpu.dot_dimension_numbers<[1], [0], [0], [1], [0, 0, 1, 1], [], []>} : vector<1x25xbf16>, vector<25x120xbf16>, vector<1x120xf32> -> vector<1x120xf32>
    %179 = arith.addf %174, %178 : vector<1x120xf32>
    %180 = vector.extract_strided_slice %103 {offsets = [15, 0], sizes = [1, 25], strides = [1, 1]} : vector<16x25xbf16> to vector<1x25xbf16>
    %c15 = arith.constant 15 : index
    %c0_92 = arith.constant 0 : index
    %c0_93 = arith.constant 0 : index
    %181 = vector.load %arg6[%c15, %c0_92, %c0_93] : memref<16x25x120xbf16, #tpu.memory_space<vmem>>, vector<1x25x120xbf16>
    %182 = vector.shape_cast %181 : vector<1x25x120xbf16> to vector<25x120xbf16>
    %cst_94 = arith.constant dense<0.000000e+00> : vector<1x120xf32>
    %183 = tpu.matmul %180, %182, %cst_94 {dimension_numbers = #tpu.dot_dimension_numbers<[1], [0], [0], [1], [0, 0, 1, 1], [], []>} : vector<1x25xbf16>, vector<25x120xbf16>, vector<1x120xf32> -> vector<1x120xf32>
    %184 = arith.addf %179, %183 : vector<1x120xf32>
    %cst_95 = arith.constant 0.000000e+00 : f32
    %185 = vector.broadcast %cst_95 : f32 to vector<1x120xf32>
    %186 = arith.maximumf %184, %185 : vector<1x120xf32>
    %187 = arith.truncf %186 : vector<1x120xf32> to vector<1x120xbf16>
    %c0_96 = arith.constant 0 : index
    %c0_97 = arith.constant 0 : index
    %188 = vector.load %arg8[%c0_96, %c0_97] : memref<120x84xbf16, #tpu.memory_space<vmem>>, vector<120x84xbf16>
    %cst_98 = arith.constant dense<0.000000e+00> : vector<1x84xf32>
    %189 = tpu.matmul %187, %188, %cst_98 {dimension_numbers = #tpu.dot_dimension_numbers<[1], [0], [0], [1], [0, 0, 1, 1], [], []>} : vector<1x120xbf16>, vector<120x84xbf16>, vector<1x84xf32> -> vector<1x84xf32>
    %c0_99 = arith.constant 0 : index
    %c0_100 = arith.constant 0 : index
    %190 = vector.load %arg9[%c0_99, %c0_100] : memref<1x84xf32, #tpu.memory_space<vmem>>, vector<1x84xf32>
    %191 = arith.addf %189, %190 : vector<1x84xf32>
    %cst_101 = arith.constant 0.000000e+00 : f32
    %192 = vector.broadcast %cst_101 : f32 to vector<1x84xf32>
    %193 = arith.maximumf %191, %192 : vector<1x84xf32>
    %194 = arith.truncf %193 : vector<1x84xf32> to vector<1x84xbf16>
    %c0_102 = arith.constant 0 : index
    %c0_103 = arith.constant 0 : index
    %195 = vector.load %arg10[%c0_102, %c0_103] : memref<84x10xbf16, #tpu.memory_space<vmem>>, vector<84x10xbf16>
    %cst_104 = arith.constant dense<0.000000e+00> : vector<1x10xf32>
    %196 = tpu.matmul %194, %195, %cst_104 {dimension_numbers = #tpu.dot_dimension_numbers<[1], [0], [0], [1], [0, 0, 1, 1], [], []>} : vector<1x84xbf16>, vector<84x10xbf16>, vector<1x10xf32> -> vector<1x10xf32>
    %c0_105 = arith.constant 0 : index
    %c0_106 = arith.constant 0 : index
    %197 = vector.load %arg11[%c0_105, %c0_106] : memref<1x10xf32, #tpu.memory_space<vmem>>, vector<1x10xf32>
    %198 = arith.addf %196, %197 : vector<1x10xf32>
    %c0_107 = arith.constant 0 : index
    %c0_108 = arith.constant 0 : index
    %c0_109 = arith.constant 0 : index
    %199 = vector.load %arg12[%c0_107, %c0_108, %c0_109] : memref<1x1x10xf32, #tpu.memory_space<vmem>>, vector<1x1x10xf32>
    %200 = vector.shape_cast %199 : vector<1x1x10xf32> to vector<1x10xf32>
    %201 = vector.shape_cast %198 : vector<1x10xf32> to vector<1x1x10xf32>
    tpu.vector_store %arg12[%c0_107, %c0_108, %c0_109], %201 {strides = array<i32>} : memref<1x1x10xf32, #tpu.memory_space<vmem>>, vector<1x1x10xf32>,
    return
  }
  func.func @transform_0(%arg0: i32) -> (i32, i32, i32, i32) {
    %c0_i32 = arith.constant 0 : i32
    %c0_i32_0 = arith.constant 0 : i32
    %c0_i32_1 = arith.constant 0 : i32
    %c0_i32_2 = arith.constant 0 : i32
    return %arg0, %c0_i32, %c0_i32_0, %c0_i32_1 : i32, i32, i32, i32
  }
  func.func @transform_1(%arg0: i32) -> (i32, i32) {
    %c0_i32 = arith.constant 0 : i32
    %c0_i32_0 = arith.constant 0 : i32
    %c0_i32_1 = arith.constant 0 : i32
    return %c0_i32, %c0_i32_0 : i32, i32
  }
  func.func @transform_2(%arg0: i32) -> (i32, i32) {
    %c0_i32 = arith.constant 0 : i32
    %c0_i32_0 = arith.constant 0 : i32
    %c0_i32_1 = arith.constant 0 : i32
    return %c0_i32, %c0_i32_0 : i32, i32
  }
  func.func @transform_3(%arg0: i32) -> (i32, i32) {
    %c0_i32 = arith.constant 0 : i32
    %c0_i32_0 = arith.constant 0 : i32
    %c0_i32_1 = arith.constant 0 : i32
    return %c0_i32, %c0_i32_0 : i32, i32
  }
  func.func @transform_4(%arg0: i32) -> (i32, i32) {
    %c0_i32 = arith.constant 0 : i32
    %c0_i32_0 = arith.constant 0 : i32
    %c0_i32_1 = arith.constant 0 : i32
    return %c0_i32, %c0_i32_0 : i32, i32
  }
  func.func @transform_5(%arg0: i32) -> (i32, i32, i32) {
    %c0_i32 = arith.constant 0 : i32
    %c0_i32_0 = arith.constant 0 : i32
    %c0_i32_1 = arith.constant 0 : i32
    %c0_i32_2 = arith.constant 0 : i32
    return %c0_i32, %c0_i32_0, %c0_i32_1 : i32, i32, i32
  }
  func.func @transform_6(%arg0: i32) -> (i32, i32) {
    %c0_i32 = arith.constant 0 : i32
    %c0_i32_0 = arith.constant 0 : i32
    %c0_i32_1 = arith.constant 0 : i32
    return %c0_i32, %c0_i32_0 : i32, i32
  }
  func.func @transform_7(%arg0: i32) -> (i32, i32) {
    %c0_i32 = arith.constant 0 : i32
    %c0_i32_0 = arith.constant 0 : i32
    %c0_i32_1 = arith.constant 0 : i32
    return %c0_i32, %c0_i32_0 : i32, i32
  }
  func.func @transform_8(%arg0: i32) -> (i32, i32) {
    %c0_i32 = arith.constant 0 : i32
    %c0_i32_0 = arith.constant 0 : i32
    %c0_i32_1 = arith.constant 0 : i32
    return %c0_i32, %c0_i32_0 : i32, i32
  }
  func.func @transform_9(%arg0: i32) -> (i32, i32) {
    %c0_i32 = arith.constant 0 : i32
    %c0_i32_0 = arith.constant 0 : i32
    %c0_i32_1 = arith.constant 0 : i32
    return %c0_i32, %c0_i32_0 : i32, i32
  }
  func.func @transform_10(%arg0: i32) -> (i32, i32) {
    %c0_i32 = arith.constant 0 : i32
    %c0_i32_0 = arith.constant 0 : i32
    %c0_i32_1 = arith.constant 0 : i32
    return %c0_i32, %c0_i32_0 : i32, i32
  }
  func.func @transform_11(%arg0: i32) -> (i32, i32, i32) {
    %c0_i32 = arith.constant 0 : i32
    %c0_i32_0 = arith.constant 0 : i32
    %c0_i32_1 = arith.constant 0 : i32
    return %arg0, %c0_i32, %c0_i32_0 : i32, i32, i32
  }
}

</mosaic_0001>

<bundles_post_ra>
// kernel: simple_cnn_forward.2
= control target key start
LH: loop header
LB: loop body
LE: loop exit
PB: predicated region body
PF: predicated region fallthrough
CT: control target
= control target key end

     0   :  { %s1070_s18 = smov 0   ;;  %s1232_s0 = inlined_call_operand.vmem [shape: bf16[2,4,75,196], index: 0, kind: input, shape index: {}]   ;;  %s1233_s1 = inlined_call_operand.vmem [shape: bf16[6,75], index: 1, kind: input, shape index: {}]   ;;  %s1234_s2 = inlined_call_operand.vmem [shape: f32[6,1], index: 2, kind: input, shape index: {}]   ;;  %s1235_s3 = inlined_call_operand.vmem [shape: f32[6,1], index: 3, kind: input, shape index: {}]   ;;  %s1236_s4 = inlined_call_operand.vmem [shape: f32[6,1], index: 4, kind: input, shape index: {}]   ;;  %s1237_s5 = inlined_call_operand.vmem [shape: bf16[2,6,196], index: 5, kind: output, shape index: {}]  }
   0x1 LB: > { %s868_s19 = sadd.s32 4294967295, %s1036_s18   ;;  %p872_p0 = scmp.ge.s32.totalorder %s1036_s18, 1  ;;  %s1036_s18 = sphi %s1070_s18, %s15_s18  }
   0x2   : > { %p187_p1 = scmp.lt.s32.totalorder %s1036_s18, 3 }
   0x4   : > { %p188_p2 = pnand %p872_p0, %p187_p1 }
   0x5   : > { %p215_p3 = scmp.lt.s32.totalorder (!%p188_p2), %s868_s19, 1  ;;  %v1038_v0 = vmov (!%p188_p2), 0   ;;  %v227_v1 = vld [vmem:[%s1234_s2] sm:$0x3f] (!%p188_p2)  ;;  %vm295_vm0 = vcmask (!%p188_p2), 1044480   ;;  %vm296_vm1 = vcmask (!%p188_p2), 1045504  }
   0x6   : > { %191 = sbr.rel (%p188_p2) target bundleno = 774 (0x306), region = 40  ;;  %337 = vmatprep.mubr.bf16.mxu0 (!%p188_p2), %v1038_v0  ;;  %443 = vmatprep.mubr.bf16.mxu1 (!%p188_p2), %v1038_v0  ;;  %v1039_v11 = vmov (!%p188_p2), 65535   ;;  %v226_v31 = vld [vmem:[%s1233_s1] sm:$0x7] (!%p188_p2)  ;;  %vm291_vm2 = vcmask (!%p188_p2), 613376   ;;  %vm673_vm3 = vcmask (!%p188_p2), 553984  }
   0x7   : > { %966 = vset.pattern.permute.xlu0 (!%p188_p2), %v1038_v0  ;;  %967 = vset.pattern.permute.xlu1 (!%p188_p2), %v1038_v0  ;;  %v297_v12 = vsel (!%p188_p2), %vm295_vm0, 4294967295, %v1039_v11  ;;  %vm809_vm4 = vcmask (!%p188_p2), 1042432   ;;  %vm810_vm5 = vcmask (!%p188_p2), 555012  }
   0x8   : > { %240 = vperm.xlu0 (!%p188_p2), %966, %v227_v1   ;;  %v1110_v20 = vsel (!%p188_p2), %vm296_vm1, %v297_v12, 0  ;;  %vm811_vm6 = vmor (!%p188_p2), %vm810_vm5, %vm809_vm4 }
   0xd   : > { %s1239_s19 = smov (!%p215_p3, %s868_s19), 1 }
   0xe   : > { %s955_s22 = smul.u32 320, %s1239_s19  ;;  %s953_s7 = sshll.u32 %s1239_s19, 3 }
   0xf   : > { %s224_s10 = scalar_lea.vmem %s1237_s5, %s953_s7 }
  0x10   : > { %s1091_s25 = scalar_lea.vmem %s1232_s0, %s955_s22 }
  0x11   : > { %v968_v2 = vld [vmem:[%s1091_s25 + $0x4] ss:$8 sps:$4 sm:$0xff]   ;;  %v970_v3 = vld [vmem:[%s1091_s25 + $0x54] ss:$8 sps:$4 sm:$0xff]   ;;  %v972_v4 = vld [vmem:[%s1091_s25] ss:$8 sps:$4 sm:$0xff]  }
  0x12   : > { %305 = vmatprep.subr.bf16.mxu0 %v968_v2  ;;  %v973_v5 = vld [vmem:[%s1091_s25 + $0x50] ss:$8 sps:$4 sm:$0xff]   ;;  %411 = vmatprep.subr.bf16.mxu1 %v970_v3  ;;  %v974_v6 = vld [vmem:[%s1091_s25 + $0x14] ss:$8 sps:$4 sm:$0xff]   ;;  %v976_v7 = vld [vmem:[%s1091_s25 + $0x64] ss:$8 sps:$4 sm:$0xff]  }
  0x13   : > { %306 = vmatpush1.bf16.msra.mxu0 %v972_v4  ;;  %412 = vmatpush1.bf16.msra.mxu1 %v973_v5  ;;  %v978_v8 = vld [vmem:[%s1091_s25 + $0x10] ss:$8 sps:$4 sm:$0xff]   ;;  %v979_v9 = vld [vmem:[%s1091_s25 + $0x60] ss:$8 sps:$4 sm:$0xff]   ;;  %v980_v10 = vld [vmem:[%s1091_s25 + $0x24] ss:$8 sps:$4 sm:$0xff]  }
  0x14   : > { %307 = vmatprep.subr.bf16.mxu0 %v974_v6  ;;  %413 = vmatprep.subr.bf16.mxu1 %v976_v7  ;;  %v982_v13 = vld [vmem:[%s1091_s25 + $0x74] ss:$8 sps:$4 sm:$0xff]   ;;  %v984_v14 = vld [vmem:[%s1091_s25 + $0x20] ss:$8 sps:$4 sm:$0xff]   ;;  %v985_v15 = vld [vmem:[%s1091_s25 + $0x70] ss:$8 sps:$4 sm:$0xff]  }
  0x15   : > { %v986_v16 = vld [vmem:[%s1091_s25 + $0x34] ss:$8 sps:$4 sm:$0xff]   ;;  %v988_v17 = vld [vmem:[%s1091_s25 + $0x84] ss:$8 sps:$4 sm:$0xff]   ;;  %v990_v18 = vld [vmem:[%s1091_s25 + $0x30] ss:$8 sps:$4 sm:$0xff]  }
  0x16   : > { %v991_v19 = vld [vmem:[%s1091_s25 + $0x80] ss:$8 sps:$4 sm:$0xff]   ;;  %v992_v21 = vld [vmem:[%s1091_s25 + $0x44] ss:$8 sps:$4 sm:$0x3f]  }
  0x17   : > { %308 = vmatpush1.bf16.msra.mxu0 %v978_v8  ;;  %414 = vmatpush1.bf16.msra.mxu1 %v979_v9  ;;  %v994_v22 = vld [vmem:[%s1091_s25 + $0x94] ss:$8 sps:$4 sm:$0x3f]   ;;  %v303_v23 = vand.u32 %v992_v21, %v1110_v20  ;;  %v996_v24 = vld [vmem:[%s1091_s25 + $0x40] ss:$8 sps:$4 sm:$0x3f]  }
  0x18   : > { %309 = vmatprep.subr.bf16.mxu0 %v980_v10  ;;  %415 = vmatprep.subr.bf16.mxu1 %v982_v13  ;;  %v997_v25 = vld [vmem:[%s1091_s25 + $0x90] ss:$8 sps:$4 sm:$0x3f]   ;;  %v409_v26 = vand.u32 %v994_v22, %v1110_v20  ;;  %v300_v27 = vand.u32 %v996_v24, %v1110_v20  ;;  %v1000_v29 = vld [vmem:[%s1091_s25 + $0xa4] ss:$8 sps:$4 sm:$0xff]  }
  0x19   : > { %v406_v28 = vand.u32 %v997_v25, %v1110_v20  ;;  %v1003_v30 = vld [vmem:[%s1091_s25 + $0xf4] ss:$8 sps:$4 sm:$0xff]   ;;  %v998_v32 = vld [vmem:[%s1091_s25 + $0xa0] ss:$8 sps:$4 sm:$0xff]   ;;  %v1001_v33 = vld [vmem:[%s1091_s25 + $0xf0] ss:$8 sps:$4 sm:$0xff]  }
  0x1a   : > { %v1006_v34 = vld [vmem:[%s1091_s25 + $0xb4] ss:$8 sps:$4 sm:$0xff]   ;;  %v1009_v35 = vld [vmem:[%s1091_s25 + $0x104] ss:$8 sps:$4 sm:$0xff]   ;;  %v1004_v36 = vld [vmem:[%s1091_s25 + $0xb0] ss:$8 sps:$4 sm:$0xff]  }
  0x1b   : > { %310 = vmatpush1.bf16.msra.mxu0 %v984_v14  ;;  %416 = vmatpush1.bf16.msra.mxu1 %v985_v15  ;;  %v1007_v37 = vld [vmem:[%s1091_s25 + $0x100] ss:$8 sps:$4 sm:$0xff]   ;;  %v1012_v38 = vld [vmem:[%s1091_s25 + $0xc4] ss:$8 sps:$4 sm:$0xff]   ;;  %v1015_v39 = vld [vmem:[%s1091_s25 + $0x114] ss:$8 sps:$4 sm:$0xff]  }
  0x1c   : > { %311 = vmatprep.subr.bf16.mxu0 %v986_v16  ;;  %417 = vmatprep.subr.bf16.mxu1 %v988_v17  ;;  %v1010_v40 = vld [vmem:[%s1091_s25 + $0xc0] ss:$8 sps:$4 sm:$0xff]   ;;  %v1013_v41 = vld [vmem:[%s1091_s25 + $0x110] ss:$8 sps:$4 sm:$0xff]   ;;  %v1018_v42 = vld [vmem:[%s1091_s25 + $0xd4] ss:$8 sps:$4 sm:$0xff]  }
  0x1d   : > { %v1021_v43 = vld [vmem:[%s1091_s25 + $0x124] ss:$8 sps:$4 sm:$0xff]   ;;  %v1027_v45 = vld [vmem:[%s1091_s25 + $0x134] ss:$8 sps:$4 sm:$0x3f]  }
  0x1e   : > { %v1024_v44 = vld [vmem:[%s1091_s25 + $0xe4] ss:$8 sps:$4 sm:$0x3f]   ;;  %v1016_v46 = vld [vmem:[%s1091_s25 + $0xd0] ss:$8 sps:$4 sm:$0xff]   ;;  %v621_v51 = vand.u32 %v1027_v45, %v1110_v20 }
  0x1f   : > { %312 = vmatpush1.bf16.msra.mxu0 %v990_v18  ;;  %418 = vmatpush1.bf16.msra.mxu1 %v991_v19  ;;  %v1019_v47 = vld [vmem:[%s1091_s25 + $0x120] ss:$8 sps:$4 sm:$0xff]   ;;  %v1025_v49 = vld [vmem:[%s1091_s25 + $0x130] ss:$8 sps:$4 sm:$0x3f]   ;;  %v515_v50 = vand.u32 %v1024_v44, %v1110_v20 }
  0x20   : > { %313 = vmatprep.subr.bf16.mxu0 %v303_v23  ;;  %419 = vmatprep.subr.bf16.mxu1 %v409_v26  ;;  %v1022_v48 = vld [vmem:[%s1091_s25 + $0xe0] ss:$8 sps:$4 sm:$0x3f]   ;;  %v618_v53 = vand.u32 %v1025_v49, %v1110_v20 }
  0x21   : > { %v512_v52 = vand.u32 %v1022_v48, %v1110_v20 }
  0x23   : > { %314 = vmatpush1.bf16.msra.mxu0 %v300_v27  ;;  %420 = vmatpush1.bf16.msra.mxu1 %v406_v28 }
  0x24   : > { %517 = vmatprep.subr.bf16.mxu0 %v1000_v29  ;;  %623 = vmatprep.subr.bf16.mxu1 %v1003_v30 }
  0x26   : > { %886 = vmatmul.mubr.msk.bf16.vlgmr.msra.gmra.mrb[0].mxu0 %vm291_vm2, %v226_v31  ;;  %907 = vmatmul.mubr.msk.bf16.vlgmr.msra.gmra.mrb[0].mxu1 %vm291_vm2, %v226_v31 }
  0x27   : > { %518 = vmatpush1.bf16.msra.mxu0 %v998_v32  ;;  %624 = vmatpush1.bf16.msra.mxu1 %v1001_v33 }
  0x28   : > { %519 = vmatprep.subr.bf16.mxu0 %v1006_v34  ;;  %625 = vmatprep.subr.bf16.mxu1 %v1009_v35 }
  0x29   : > { %549 = vmatprep.mubr.bf16.mxu0 %v1038_v0  ;;  %655 = vmatprep.mubr.bf16.mxu1 %v1038_v0 }
  0x2b   : > { %520 = vmatpush1.bf16.msra.mxu0 %v1004_v36  ;;  %626 = vmatpush1.bf16.msra.mxu1 %v1007_v37 }
  0x2c   : > { %521 = vmatprep.subr.bf16.mxu0 %v1012_v38  ;;  %627 = vmatprep.subr.bf16.mxu1 %v1015_v39 }
  0x2f   : > { %522 = vmatpush1.bf16.msra.mxu0 %v1010_v40  ;;  %628 = vmatpush1.bf16.msra.mxu1 %v1013_v41 }
  0x30   : > { %523 = vmatprep.subr.bf16.mxu0 %v1018_v42  ;;  %629 = vmatprep.subr.bf16.mxu1 %v1021_v43 }
  0x33   : > { %524 = vmatpush1.bf16.msra.mxu0 %v1016_v46  ;;  %630 = vmatpush1.bf16.msra.mxu1 %v1019_v47 }
  0x34   : > { %525 = vmatprep.subr.bf16.mxu0 %v515_v50  ;;  %631 = vmatprep.subr.bf16.mxu1 %v621_v51 }
  0x37   : > { %526 = vmatpush1.bf16.msra.mxu0 %v512_v52  ;;  %632 = vmatpush1.bf16.msra.mxu1 %v618_v53 }
  0x3a   : > { %928 = vmatmul.mubr.msk.bf16.vlgmr.msra.gmra.mrb[4].mxu0 %vm291_vm2, %v226_v31  ;;  %949 = vmatmul.mubr.msk.bf16.vlgmr.msra.gmra.mrb[4].mxu1 %vm291_vm2, %v226_v31 }
  0x87   : > { %v241_v62 = vpop.permute.xlu0 %240 }
  0xf9   : > { %v339_v54 = vpop.f32.mrb[0].mxu0  ;;  %v445_v55 = vpop.f32.mrb[0].mxu1 }
  0xfa   : > { %v341_v56 = vpop.f32.mrb[1].mxu0  ;;  %v447_v57 = vpop.f32.mrb[1].mxu1  ;;  %v1153_v63 = vadd.f32 %v339_v54, %v241_v62  ;;  %v1155_v0 = vadd.f32 %v445_v55, %v241_v62 }
  0xfb   : > { %v343_v58 = vpop.f32.mrb[2].mxu0  ;;  %v449_v59 = vpop.f32.mrb[2].mxu1  ;;  %v1157_v1 = vadd.f32 %v341_v56, %v241_v62  ;;  %v1159_v2 = vadd.f32 %v447_v57, %v241_v62 }
  0xfc   : > { %v344_v60 = vpop.f32.mrb[3].mxu0  ;;  %v450_v61 = vpop.f32.mrb[3].mxu1  ;;  %v666_v6 = vadd.f32 %v1155_v0, %v1153_v63 }
  0xfd   : > { %v667_v9 = vadd.f32 %v1159_v2, %v1157_v1 }
 0x10d   : > { %v551_v3 = vpop.f32.mrb[4].mxu0  ;;  %v657_v4 = vpop.f32.mrb[4].mxu1 }
 0x10e   : > { %v1161_v5 = vadd.f32 %v551_v3, %v241_v62  ;;  %v553_v7 = vpop.f32.mrb[5].mxu0  ;;  %v659_v8 = vpop.f32.mrb[5].mxu1  ;;  %v1170_v14 = vadd.f32 %v657_v4, %v241_v62 }
 0x10f   : > { %v1167_v10 = vadd.f32 %v553_v7, %v241_v62  ;;  %v555_v11 = vpop.f32.mrb[6].mxu0  ;;  %v661_v12 = vpop.f32.mrb[6].mxu1  ;;  %v1173_v18 = vadd.f32 %v659_v8, %v241_v62 }
 0x110   : > { %v668_v13 = vadd.f32 %v666_v6, %v1161_v5  ;;  %v556_v15 = vpop.f32.mrb[7].mxu0  ;;  %v662_v16 = vpop.f32.mrb[7].mxu1 }
 0x111   : > { %v669_v17 = vadd.f32 %v667_v9, %v1167_v10 }
 0x112   : > { %v670_v19 = vadd.f32 %v668_v13, %v1170_v14 }
 0x113   : > { %v671_v20 = vadd.f32 %v669_v17, %v1173_v18 }
 0x114   : > { %v672_v21 = vsel %vm296_vm1, %v670_v19, 0.0 }
 0x115   : > { %v674_v22 = vsel %vm673_vm3, %v671_v20, 0.0 }
 0x116   : > { %v675_v23 = vadd.f32 %v674_v22, %v672_v21 }
 0x118   : > { %676 = vadd.xlane.f32.xlu0 %v675_v23 }
 0x1a5   : > { %v677_v24 = vpop.xlane.xlu0 %676 }
 0x1a6   : > { %v678_v25 = vsel %vm296_vm1, %v677_v24, 0.0 }
 0x1a7   : > { %v679_v26 = vrot.slane %v678_v25, 4 }
 0x1a9   : > { %v680_v27 = vadd.f32 %v679_v26, %v678_v25 }
 0x1ab   : > { %v681_v28 = vrot.slane %v680_v27, 2 }
 0x1ad   : > { %v682_v29 = vadd.f32 %v681_v28, %v680_v27 }
 0x1af   : > { %v683_v30 = vrot.slane %v682_v29, 1 }
 0x1b1   : > { %v684_v31 = vadd.f32 %v683_v30, %v682_v29 }
 0x1b3   : > { %v1180_v32 = vmul.f32 0.00021258503, %v684_v31 }
 0x1b5   : > { %v687_v33 = vsub.f32 %v1153_v63, %v1180_v32  ;;  %v688_v34 = vsub.f32 %v1157_v1, %v1180_v32  ;;  %v704_v35 = vsub.f32 %v1155_v0, %v1180_v32  ;;  %v705_v36 = vsub.f32 %v1159_v2, %v1180_v32 }
 0x1b6   : > { %v721_v37 = vsub.f32 %v1161_v5, %v1180_v32  ;;  %v722_v38 = vsub.f32 %v1167_v10, %v1180_v32  ;;  %v738_v46 = vsub.f32 %v1170_v14, %v1180_v32  ;;  %v739_v47 = vsub.f32 %v1173_v18, %v1180_v32 }
 0x1b7   : > { %v689_v39 = vmul.f32 %v687_v33, %v687_v33  ;;  %v690_v40 = vmul.f32 %v688_v34, %v688_v34  ;;  %v706_v41 = vmul.f32 %v704_v35, %v704_v35  ;;  %v707_v42 = vmul.f32 %v705_v36, %v705_v36 }
 0x1b8   : > { %v723_v50 = vmul.f32 %v721_v37, %v721_v37  ;;  %v724_v51 = vmul.f32 %v722_v38, %v722_v38  ;;  %v740_v55 = vmul.f32 %v738_v46, %v738_v46  ;;  %v741_v56 = vmul.f32 %v739_v47, %v739_v47  ;;  %v665_v46 = vld [vmem:[%s1236_s4] sm:$0x3f] }
 0x1b9   : > { %v691_v43 = vsel %vm296_vm1, %v689_v39, 0.0  ;;  %v692_v44 = vsel %vm673_vm3, %v690_v40, 0.0  ;;  %v708_v48 = vsel %vm296_vm1, %v706_v41, 0.0  ;;  %v709_v49 = vsel %vm673_vm3, %v707_v42, 0.0 }
 0x1ba   : > { %v693_v45 = vadd.f32 %v692_v44, %v691_v43  ;;  %v710_v52 = vadd.f32 %v709_v49, %v708_v48  ;;  %v725_v53 = vsel %vm296_vm1, %v723_v50, 0.0  ;;  %v726_v54 = vsel %vm673_vm3, %v724_v51, 0.0  ;;  %v664_v43 = vld [vmem:[%s1235_s3] sm:$0x3f] }
 0x1bb   : > { %v727_v57 = vadd.f32 %v726_v54, %v725_v53  ;;  %v742_v58 = vsel %vm296_vm1, %v740_v55, 0.0  ;;  %v743_v59 = vsel %vm673_vm3, %v741_v56, 0.0 }
 0x1bc   : > { %694 = vadd.xlane.f32.xlu1 %v693_v45  ;;  %v744_v60 = vadd.f32 %v743_v59, %v742_v58 }
 0x1c0   : > { %711 = vadd.xlane.f32.xlu1 %v710_v52 }
 0x1c4   : > { %728 = vadd.xlane.f32.xlu1 %v727_v57 }
 0x1c8   : > { %745 = vadd.xlane.f32.xlu1 %v744_v60 }
 0x249   : > { %v695_v61 = vpop.xlane.xlu1 %694 }
 0x24a   : > { %v696_v62 = vsel %vm296_vm1, %v695_v61, 0.0 }
 0x24b   : > { %v697_v3 = vrot.slane %v696_v62, 4 }
 0x24d   : > { %v698_v4 = vadd.f32 %v697_v3, %v696_v62  ;;  %v712_v6 = vpop.xlane.xlu1 %711 }
 0x24e   : > { %v713_v7 = vsel %vm296_vm1, %v712_v6, 0.0 }
 0x24f   : > { %v714_v8 = vrot.slane %v713_v7, 4  ;;  %v699_v9 = vrot.slane %v698_v4, 2 }
 0x251   : > { %v715_v11 = vadd.f32 %v714_v8, %v713_v7  ;;  %v729_v12 = vpop.xlane.xlu1 %728  ;;  %v700_v17 = vadd.f32 %v699_v9, %v698_v4 }
 0x252   : > { %v730_v13 = vsel %vm296_vm1, %v729_v12, 0.0 }
 0x253   : > { %v716_v15 = vrot.slane %v715_v11, 2  ;;  %v731_v16 = vrot.slane %v730_v13, 4  ;;  %v701_v26 = vrot.slane %v700_v17, 1 }
 0x255   : > { %v717_v19 = vadd.f32 %v716_v15, %v715_v11  ;;  %v732_v20 = vadd.f32 %v731_v16, %v730_v13  ;;  %v746_v21 = vpop.xlane.xlu1 %745  ;;  %v702_v33 = vadd.f32 %v701_v26, %v700_v17 }
 0x256   : > { %v747_v22 = vsel %vm296_vm1, %v746_v21, 0.0 }
 0x257   : > { %v718_v23 = vrot.slane %v717_v19, 1  ;;  %v733_v24 = vrot.slane %v732_v20, 2  ;;  %v748_v25 = vrot.slane %v747_v22, 4 }
 0x259   : > { %v734_v27 = vadd.f32 %v733_v24, %v732_v20  ;;  %v749_v28 = vadd.f32 %v748_v25, %v747_v22  ;;  %v719_v29 = vadd.f32 %v718_v23, %v717_v19 }
 0x25b   : > { %v735_v30 = vrot.slane %v734_v27, 1  ;;  %v750_v31 = vrot.slane %v749_v28, 2  ;;  %v720_v36 = vadd.f32 %v719_v29, %v702_v33 }
 0x25d   : > { %v736_v34 = vadd.f32 %v735_v30, %v734_v27  ;;  %v751_v35 = vadd.f32 %v750_v31, %v749_v28 }
 0x25f   : > { %v752_v37 = vrot.slane %v751_v35, 1  ;;  %v737_v38 = vadd.f32 %v736_v34, %v720_v36 }
 0x261   : > { %v753_v39 = vadd.f32 %v752_v37, %v751_v35 }
 0x263   : > { %v754_v40 = vadd.f32 %v753_v39, %v737_v38 }
 0x265   : > { %v755_v41 = vmul.f32 0.00021258503, %v754_v40 }
 0x267   : > { %v756_v42 = vadd.f32 1e-05, %v755_v41 }
 0x269   : > { %1028 = vrsqrt.f32 %v756_v42 }
 0x273   : > { %v1029_v44 = vpop.eup %1028 }
 0x274   : > { %v758_v45 = vmul.f32 %v1029_v44, %v664_v43 }
 0x276   : > { %763 = vperm.xlu1 %967, %v758_v45   ;;  %v759_v47 = vmul.f32 %v758_v45, %v1180_v32 }
 0x278   : > { %v760_v48 = vsub.f32 %v665_v46, %v759_v47 }
 0x27a   : > { %770 = vperm.xlu1 %967, %v760_v48  }
 0x2f5   : > { %v764_v49 = vpop.permute.xlu1 %763 }
 0x2f6   : > { %v766_v50 = vmul.f32 %v764_v49, %v1153_v63  ;;  %v767_v51 = vmul.f32 %v764_v49, %v1157_v1  ;;  %v777_v52 = vmul.f32 %v764_v49, %v1155_v0  ;;  %v778_v53 = vmul.f32 %v764_v49, %v1159_v2 }
 0x2f7   : > { %v783_v54 = vmul.f32 %v764_v49, %v1161_v5  ;;  %v784_v55 = vmul.f32 %v764_v49, %v1167_v10  ;;  %v789_v56 = vmul.f32 %v764_v49, %v1170_v14  ;;  %v790_v57 = vmul.f32 %v764_v49, %v1173_v18 }
 0x2f9   : > { %v771_v32 = vpop.permute.xlu1 %770 }
 0x2fa   : > { %v773_v58 = vadd.f32 %v771_v32, %v766_v50  ;;  %v774_v59 = vadd.f32 %v771_v32, %v767_v51  ;;  %v779_v60 = vadd.f32 %v777_v52, %v771_v32  ;;  %v780_v63 = vadd.f32 %v778_v53, %v771_v32 }
 0x2fb   : > { %v785_v61 = vadd.f32 %v783_v54, %v771_v32  ;;  %v786_v1 = vadd.f32 %v784_v55, %v771_v32  ;;  %v791_v62 = vadd.f32 %v789_v56, %v771_v32  ;;  %v792_v0 = vadd.f32 %v790_v57, %v771_v32 }
 0x2fc   : > { %v775_v3 = vmax.f32 %v773_v58, 0.0  ;;  %v776_v2 = vmax.f32 %v774_v59, 0.0  ;;  %v781_v4 = vmax.f32 %v779_v60, 0.0  ;;  %v782_v5 = vmax.f32 %v780_v63, 0.0 }
 0x2fd   : > { %v787_v6 = vmax.f32 %v785_v61, 0.0  ;;  %v788_v10 = vmax.f32 %v786_v1, 0.0  ;;  %v793_v7 = vmax.f32 %v791_v62, 0.0  ;;  %v794_v14 = vmax.f32 %v792_v0, 0.0 }
 0x2fe   : > { %v795_v8 = vmax.f32 %v775_v3, %v781_v4  ;;  %v796_v18 = vmax.f32 %v776_v2, %v782_v5 }
 0x2ff   : > { %v797_v9 = vmax.f32 %v787_v6, %v793_v7  ;;  %v798_v11 = vmax.f32 %v788_v10, %v794_v14 }
 0x301   : > { %v799_v12 = vmax.f32 %v795_v8, %v797_v9  ;;  %v800_v13 = vmax.f32 %v796_v18, %v798_v11 }
 0x303   : > { %v954_v15 = vpack.c.bf16 %v800_v13, %v799_v12 }
 0x305   : > { %812 = vst.msk [vmem:[%s224_s10] sm:$0x77] %vm811_vm6, %v954_v15 }
 0x306 PF: > { %s15_s18 = sadd.s32 1, %s1036_s18  }
 0x307   : > { %p12_p4 = scmp.ge.s32.totalorder %s15_s18, 4  }
 0x309   :  { %14 = sbr.rel (!%p12_p4) target bundleno = 1 (0x1), region = 73 }

// kernel: simple_cnn_forward.3
= control target key start
LH: loop header
LB: loop body
LE: loop exit
PB: predicated region body
PF: predicated region fallthrough
CT: control target
= control target key end

     0   :  { %16 = vsyncpa [#allocation3], 0  ;;  %s3727_s0 = inlined_call_operand.vmem [shape: bf16[2,4,150,25], index: 0, kind: input, shape index: {}]   ;;  %s3728_s1 = inlined_call_operand.vmem [shape: bf16[16,150], index: 1, kind: input, shape index: {}]   ;;  %s3729_s2 = inlined_call_operand.vmem [shape: f32[16,1], index: 2, kind: input, shape index: {}]   ;;  %s3730_s3 = inlined_call_operand.vmem [shape: f32[16,1], index: 3, kind: input, shape index: {}]   ;;  %s3731_s4 = inlined_call_operand.vmem [shape: f32[16,1], index: 4, kind: input, shape index: {}]   ;;  %s3732_s5 = inlined_call_operand.vmem [shape: bf16[16,25,120], index: 5, kind: input, shape index: {}]   ;;  %s3733_s6 = inlined_call_operand.vmem [shape: f32[1,120], index: 6, kind: input, shape index: {}]   ;;  %s3734_s7 = inlined_call_operand.vmem [shape: bf16[120,84], index: 7, kind: input, shape index: {}]   ;;  %s3735_s8 = inlined_call_operand.vmem [shape: f32[1,84], index: 8, kind: input, shape index: {}]   ;;  %s3736_s9 = inlined_call_operand.vmem [shape: bf16[84,10], index: 9, kind: input, shape index: {}]   ;;  %s3737_s10 = inlined_call_operand.vmem [shape: f32[1,10], index: 10, kind: input, shape index: {}]   ;;  %s3738_s11 = inlined_call_operand.hbm [shape: f32[2,1,10], index: 11, kind: output, shape index: {}]  }
   0x1   :  { %18 = vsyncpa [#allocation3 + $0x1], 0  ;;  %s3148_s17 = smov 0   ;;  %s3150_s18 = smov 0  }
   0x2   :  { %s3152_s19 = smov 0   ;;  %s3154_s20 = smov 0  }
   0x3 LB: > { %s3169_s21 = sadd.s32 4294967295, %s3081_s20   ;;  %s2358_s22 = sadd.s32 4294967294, %s3081_s20   ;;  %s3081_s20 = sphi %s3154_s20, %s3744_s20   ;;  %s3077_s19 = sphi %s3152_s19, %s3743_s19   ;;  %s3073_s18 = sphi %s3150_s18, %s3742_s18   ;;  %s3069_s17 = sphi %s3148_s17, %s3741_s17  }
   0x4   : > { %s3173_s23 = sadd.s32 1, %s3081_s20   ;;  %s267_s24 = sadd.s32 1, %s3077_s19 }
   0x5   : > { %s264_s25 = ssub.s32 %s3081_s20, %s3173_s23  ;;  %p277_p0 = scmp.ne.s32.totalorder %s3077_s19, %s3073_s18 }
   0x6   : > { %p265_p1 = scmp.eq.s32.totalorder %s264_s25, 0  ;;  %p278_p2 = scmp.eq.s32.totalorder %s3169_s21, 1 }
   0x7   : > { %p283_p3 = scmp.ne.s32.totalorder %s3073_s18, %s3069_s17  ;;  %p284_p4 = scmp.eq.s32.totalorder %s2358_s22, 1 }
   0x8   : > { %s3184_s26 = scalar_select %p265_p1, %s3077_s19, %s267_s24  }
   0x9   : > { %p3186_p5 = por %p278_p2, %p277_p0  ;;  %p3190_p6 = por %p284_p4, %p283_p3 }
   0xa   : > { %p2361_p7 = scmp.ge.s32.totalorder %s3081_s20, 1  ;;  %p340_p8 = scmp.lt.s32.totalorder %s3081_s20, 3 }
   0xc   : > { %p341_p9 = pnand %p2361_p7, %p340_p8 }
   0xd   : > { %p379_p10 = scmp.lt.s32.totalorder (!%p341_p9), %s3169_s21, 1  ;;  %vm484_vm0 = vcmask (!%p341_p9), 179200   ;;  %v3083_v0 = vmov (!%p341_p9), 0   ;;  %v3201_v1 = vld [vmem:[%s3728_s1 + $0x4] ss:$8 sps:$4 sm:$0xff] (!%p341_p9)   ;;  %vm488_vm1 = vcmask (!%p341_p9), 1042432  }
   0xe   : > { %344 = sbr.rel (%p341_p9) target bundleno = 1719 (0x6b7), region = 64  ;;  %492 = vmatprep.subr.bf16.mxu1 (!%p341_p9), %v3083_v0  ;;  %734 = vmatprep.subr.bf16.mxu0 (!%p341_p9), %v3083_v0  ;;  %v387_v2 = vld [vmem:[%s3729_s2] sm:$0xff] (!%p341_p9)  ;;  %v388_v3 = vld [vmem:[%s3729_s2 + $0x8] sm:$0xff] (!%p341_p9)  ;;  %vm906_vm2 = vcmask (!%p341_p9), 203776   ;;  %vm1073_vm3 = vcmask (!%p341_p9), 1043456   ;;  %vm1074_vm4 = vcmask (!%p341_p9), 1044480  }
   0xf   : > { %2926 = vset.pattern.permute.xlu0 (!%p341_p9), %v3083_v0  ;;  %2927 = vset.pattern.permute.xlu1 (!%p341_p9), %v3083_v0  ;;  %v3259_v23 = vld [vmem:[%s3728_s1] ss:$8 sps:$4 sm:$0xff] (!%p341_p9)   ;;  %vm3086_vm5 = vmmov (!%p341_p9), 0   ;;  %vm2146_vm6 = vcmask (!%p341_p9), 982016   ;;  %vm2244_vm7 = vcmask (!%p341_p9), 1041408   ;;  %vm2240_vm8 = vcmask (!%p341_p9), 687104  }
  0x10   : > { %2375 = vmatprep.mubr.msk.bf16.mxu1 (!%p341_p9), %vm484_vm0, %v3201_v1  ;;  %2435 = vmatprep.mubr.msk.bf16.mxu0 (!%p341_p9), %vm484_vm0, %v3201_v1  ;;  %s377_s22 = sand.u32 (!%p341_p9), 1, %s3073_s18   ;;  %vm2288_vm9 = vcmask (!%p341_p9), 73728   ;;  %s3087_s24 = smov (!%p341_p9), [#allocation2]  }
  0x11   : > { %410 = vperm.xlu0 (!%p341_p9), %2926, %v387_v2   ;;  %s378_s30 = scalar_lea.vmem (!%p341_p9), [#allocation2], %s377_s22  ;;  %s3023_s25 = sshll.u32 (!%p341_p9), %s3087_s24, 4  ;;  %s3024_s25 = int_to_ptr.vmem [resolvable:$false] %s3023_s25 }
  0x12   : > { %s2303_s12 = sshll.u32 (!%p341_p9), %s378_s30, 4  ;;  %s3025_s13 = scalar_lea.vmem (!%p341_p9), %s3024_s25, 32  ;;  %s3687_s12 = int_to_ptr.vmem [resolvable:$true] %s2303_s12 }
  0x13   : > { %s3019_s16 = scalar_lea.vmem (!%p341_p9), %s3687_s12, 16  ;;  %p3026_p0 = scmp.lt.s32.totalorder (!%p341_p9), %s3687_s12, %s3024_s25 }
  0x14   : > { %p3020_p11 = scmp.ne.s32.totalorder (!%p341_p9), %s3687_s12, %s3019_s16  ;;  %p3027_p1 = scmp.lt.s32.totalorder (!%p341_p9), %s3025_s13, %s3019_s16 }
  0x15   : > { %s380_s14 = scalar_select %p379_p10, %s3169_s21, 1  ;;  %415 = vperm.xlu0 %2926, %v388_v3  }
  0x16   : > { %p3021_p12 = pnand %p3020_p11, %p3186_p5  ;;  %p3028_p2 = por %p3027_p1, %p3026_p0 }
  0x17   : > { %s2882_s15 = smul.u32 304, %s380_s14 }
  0x18   : > { %p3022_p13 = pneg %p3021_p12 }
  0x19   : > { %s3220_s29 = scalar_lea.vmem %s3727_s0, %s2882_s15 }
  0x1a   : > { %v2928_v4 = vld [vmem:[%s3220_s29] sm:$0xff]   ;;  %v2929_v5 = vld [vmem:[%s3220_s29 + $0x8] sm:$0xff]   ;;  %v2930_v6 = vld [vmem:[%s3220_s29 + $0x10] sm:$0xff]   ;;  %p3029_p3 = pnand %p3028_p2, %p3022_p13 }
  0x1b   : > { %493 = vmatpush1.bf16.msra.mxu1 %v2928_v4  ;;  %v2931_v7 = vld [vmem:[%s3220_s29 + $0x18] sm:$0xff]   ;;  %v2944_v9 = vld [vmem:[%s3220_s29 + $0xa0] sm:$0xff]   ;;  %v2946_v11 = vld [vmem:[%s3220_s29 + $0xa8] sm:$0xff]  }
  0x1c   : > { %494 = vmatprep.subr.bf16.mxu1 %v3083_v0  ;;  %v2942_v8 = vld [vmem:[%s3220_s29 + $0x98] sm:$0xff]   ;;  %v2932_v10 = vld [vmem:[%s3220_s29 + $0x20] sm:$0xff]   ;;  %v2933_v12 = vld [vmem:[%s3220_s29 + $0x28] sm:$0xff]  }
  0x1d   : > { %735 = vmatpush1.bf16.msra.mxu0 %v2942_v8  ;;  %v2948_v13 = vld [vmem:[%s3220_s29 + $0xb0] sm:$0xff]   ;;  %v2950_v15 = vld [vmem:[%s3220_s29 + $0xb8] sm:$0xff]   ;;  %v2937_v17 = vld [vmem:[%s3220_s29 + $0x48] ss:$0 sps:$4 sm:$0x77]  }
  0x1e   : > { %736 = vmatprep.subr.bf16.mxu0 %v3083_v0  ;;  %v2934_v14 = vld [vmem:[%s3220_s29 + $0x30] sm:$0xff]   ;;  %v2935_v16 = vld [vmem:[%s3220_s29 + $0x38] sm:$0xff]   ;;  %v2952_v18 = vld [vmem:[%s3220_s29 + $0xc0] sm:$0xff]   ;;  %v490_v22 = vsel %vm488_vm1, %v2937_v17, 0 }
  0x1f   : > { %495 = vmatpush1.bf16.msra.mxu1 %v2929_v5  ;;  %v2936_v19 = vld [vmem:[%s3220_s29 + $0x40] sm:$0xff]   ;;  %v2954_v20 = vld [vmem:[%s3220_s29 + $0xc8] sm:$0xff]   ;;  %v2956_v24 = vld [vmem:[%s3220_s29 + $0xd0] sm:$0xff]  }
  0x20   : > { %496 = vmatprep.subr.bf16.mxu1 %v3083_v0  ;;  %v2960_v21 = vld [vmem:[%s3220_s29 + $0xe0] ss:$0 sps:$4 sm:$0x77]   ;;  %v2941_v25 = vld [vmem:[%s3220_s29 + $0x4c] sm:$0xff]   ;;  %v2958_v27 = vld [vmem:[%s3220_s29 + $0xd8] sm:$0xff]  }
  0x21   : > { %737 = vmatpush1.bf16.msra.mxu0 %v2944_v9  ;;  %v2970_v26 = vld [vmem:[%s3220_s29 + $0x12c] ss:$0 sps:$4 sm:$0x77]   ;;  %v2943_v28 = vld [vmem:[%s3220_s29 + $0x54] sm:$0xff]   ;;  %v732_v29 = vsel %vm488_vm1, %v2960_v21, 0  ;;  %v2945_v31 = vld [vmem:[%s3220_s29 + $0x5c] sm:$0xff]  }
  0x22   : > { %738 = vmatprep.subr.bf16.mxu0 %v3083_v0  ;;  %v3270_v30 = vsel %vm488_vm1, %v2970_v26, 0  ;;  %v2947_v32 = vld [vmem:[%s3220_s29 + $0x64] sm:$0xff]   ;;  %v2949_v33 = vld [vmem:[%s3220_s29 + $0x6c] sm:$0xff]   ;;  %v2951_v34 = vld [vmem:[%s3220_s29 + $0x74] sm:$0xff]  }
  0x23   : > { %497 = vmatpush1.bf16.msra.mxu1 %v2930_v6  ;;  %v2953_v35 = vld [vmem:[%s3220_s29 + $0x7c] sm:$0xff]   ;;  %v2955_v36 = vld [vmem:[%s3220_s29 + $0x84] sm:$0xff]   ;;  %v2957_v37 = vld [vmem:[%s3220_s29 + $0x8c] sm:$0xff]  }
  0x24   : > { %498 = vmatprep.subr.bf16.mxu1 %v3083_v0  ;;  %v2959_v38 = vld [vmem:[%s3220_s29 + $0x94] ss:$0 sps:$4 sm:$0x77]   ;;  %v2961_v40 = vld [vmem:[%s3220_s29 + $0xe4] sm:$0xff]   ;;  %v2962_v41 = vld [vmem:[%s3220_s29 + $0xec] sm:$0xff]  }
  0x25   : > { %739 = vmatpush1.bf16.msra.mxu0 %v2946_v11  ;;  %v611_v39 = vsel %vm488_vm1, %v2959_v38, 0  ;;  %v2963_v42 = vld [vmem:[%s3220_s29 + $0xf4] sm:$0xff]   ;;  %v2964_v43 = vld [vmem:[%s3220_s29 + $0xfc] sm:$0xff]   ;;  %v2965_v44 = vld [vmem:[%s3220_s29 + $0x104] sm:$0xff]  }
  0x26   : > { %740 = vmatprep.subr.bf16.mxu0 %v3083_v0  ;;  %v2966_v45 = vld [vmem:[%s3220_s29 + $0x10c] sm:$0xff]   ;;  %v2967_v46 = vld [vmem:[%s3220_s29 + $0x114] sm:$0xff]   ;;  %v2968_v47 = vld [vmem:[%s3220_s29 + $0x11c] sm:$0xff]  }
  0x27   : > { %499 = vmatpush1.bf16.msra.mxu1 %v2931_v7  ;;  %v2969_v48 = vld [vmem:[%s3220_s29 + $0x124] sm:$0xff]   ;;  %s2590_s29 = sshll.u32 %s3169_s21, 4  ;;  %s2291_s21 = scalar_lea.sflag [#allocation3], %s377_s22 }
  0x28   : > { %500 = vmatprep.subr.bf16.mxu1 %v3083_v0  ;;  %s3685_s15 = scalar_lea.hbm %s3738_s11, %s2590_s29 }
  0x29   : > { %741 = vmatpush1.bf16.msra.mxu0 %v2948_v13 }
  0x2a   : > { %742 = vmatprep.subr.bf16.mxu0 %v3083_v0 }
  0x2b   : > { %501 = vmatpush1.bf16.msra.mxu1 %v2932_v10 }
  0x2c   : > { %502 = vmatprep.subr.bf16.mxu1 %v3083_v0 }
  0x2d   : > { %743 = vmatpush1.bf16.msra.mxu0 %v2950_v15 }
  0x2e   : > { %744 = vmatprep.subr.bf16.mxu0 %v3083_v0 }
  0x2f   : > { %503 = vmatpush1.bf16.msra.mxu1 %v2933_v12 }
  0x30   : > { %504 = vmatprep.subr.bf16.mxu1 %v3083_v0 }
  0x31   : > { %745 = vmatpush1.bf16.msra.mxu0 %v2952_v18 }
  0x32   : > { %746 = vmatprep.subr.bf16.mxu0 %v3083_v0 }
  0x33   : > { %505 = vmatpush1.bf16.msra.mxu1 %v2934_v14 }
  0x34   : > { %506 = vmatprep.subr.bf16.mxu1 %v3083_v0 }
  0x35   : > { %747 = vmatpush1.bf16.msra.mxu0 %v2954_v20 }
  0x36   : > { %748 = vmatprep.subr.bf16.mxu0 %v3083_v0 }
  0x37   : > { %507 = vmatpush1.bf16.msra.mxu1 %v2935_v16 }
  0x38   : > { %508 = vmatprep.subr.bf16.mxu1 %v3083_v0 }
  0x39   : > { %749 = vmatpush1.bf16.msra.mxu0 %v2956_v24 }
  0x3a   : > { %750 = vmatprep.subr.bf16.mxu0 %v3083_v0 }
  0x3b   : > { %509 = vmatpush1.bf16.msra.mxu1 %v2936_v19 }
  0x3c   : > { %510 = vmatprep.subr.bf16.mxu1 %v3083_v0 }
  0x3d   : > { %751 = vmatpush1.bf16.msra.mxu0 %v2958_v27 }
  0x3e   : > { %752 = vmatprep.subr.bf16.mxu0 %v3083_v0 }
  0x3f   : > { %511 = vmatpush1.bf16.msra.mxu1 %v490_v22 }
  0x40   : > { %613 = vmatprep.subr.bf16.mxu1 %v3083_v0 }
  0x41   : > { %753 = vmatpush1.bf16.msra.mxu0 %v732_v29 }
  0x42   : > { %525 = vmatmul.mubr.bf16.vlgmr.msra.gmra.mrb[0].mxu1 %v3259_v23 }
  0x43   : > { %614 = vmatpush1.bf16.msra.mxu1 %v2941_v25  ;;  %2405 = vmatprep.mubr.msk.bf16.mxu1 %vm484_vm0, %v3201_v1 }
  0x44   : > { %615 = vmatprep.subr.bf16.mxu1 %v3083_v0  ;;  %767 = vmatmul.mubr.bf16.vlgmr.msra.gmra.mrb[0].mxu0 %v3259_v23 }
  0x47   : > { %616 = vmatpush1.bf16.msra.mxu1 %v2943_v28 }
  0x48   : > { %617 = vmatprep.subr.bf16.mxu1 %v3083_v0 }
  0x4b   : > { %618 = vmatpush1.bf16.msra.mxu1 %v2945_v31 }
  0x4c   : > { %619 = vmatprep.subr.bf16.mxu1 %v3083_v0 }
  0x4f   : > { %620 = vmatpush1.bf16.msra.mxu1 %v2947_v32 }
  0x50   : > { %621 = vmatprep.subr.bf16.mxu1 %v3083_v0 }
  0x53   : > { %622 = vmatpush1.bf16.msra.mxu1 %v2949_v33 }
  0x54   : > { %623 = vmatprep.subr.bf16.mxu1 %v3083_v0 }
  0x57   : > { %624 = vmatpush1.bf16.msra.mxu1 %v2951_v34 }
  0x58   : > { %625 = vmatprep.subr.bf16.mxu1 %v3083_v0 }
  0x5b   : > { %626 = vmatpush1.bf16.msra.mxu1 %v2953_v35 }
  0x5c   : > { %627 = vmatprep.subr.bf16.mxu1 %v3083_v0 }
  0x5f   : > { %628 = vmatpush1.bf16.msra.mxu1 %v2955_v36 }
  0x60   : > { %629 = vmatprep.subr.bf16.mxu1 %v3083_v0 }
  0x63   : > { %630 = vmatpush1.bf16.msra.mxu1 %v2957_v37 }
  0x64   : > { %631 = vmatprep.subr.bf16.mxu1 %v3083_v0 }
  0x67   : > { %632 = vmatpush1.bf16.msra.mxu1 %v611_v39 }
  0x68   : > { %855 = vmatprep.subr.bf16.mxu1 %v3083_v0 }
  0x6a   : > { %646 = vmatmul.mubr.bf16.vlgmr.msra.gmra.mrb[4].mxu1 %v3259_v23 }
  0x6b   : > { %856 = vmatpush1.bf16.msra.mxu1 %v2961_v40  ;;  %2465 = vmatprep.mubr.msk.bf16.mxu1 %vm484_vm0, %v3201_v1 }
  0x6c   : > { %857 = vmatprep.subr.bf16.mxu1 %v3083_v0 }
  0x6f   : > { %858 = vmatpush1.bf16.msra.mxu1 %v2962_v41 }
  0x70   : > { %859 = vmatprep.subr.bf16.mxu1 %v3083_v0 }
  0x73   : > { %860 = vmatpush1.bf16.msra.mxu1 %v2963_v42 }
  0x74   : > { %861 = vmatprep.subr.bf16.mxu1 %v3083_v0 }
  0x77   : > { %862 = vmatpush1.bf16.msra.mxu1 %v2964_v43 }
  0x78   : > { %863 = vmatprep.subr.bf16.mxu1 %v3083_v0 }
  0x7b   : > { %864 = vmatpush1.bf16.msra.mxu1 %v2965_v44 }
  0x7c   : > { %865 = vmatprep.subr.bf16.mxu1 %v3083_v0 }
  0x7f   : > { %866 = vmatpush1.bf16.msra.mxu1 %v2966_v45 }
  0x80   : > { %867 = vmatprep.subr.bf16.mxu1 %v3083_v0 }
  0x83   : > { %868 = vmatpush1.bf16.msra.mxu1 %v2967_v46 }
  0x84   : > { %869 = vmatprep.subr.bf16.mxu1 %v3083_v0 }
  0x87   : > { %870 = vmatpush1.bf16.msra.mxu1 %v2968_v47 }
  0x88   : > { %871 = vmatprep.subr.bf16.mxu1 %v3083_v0 }
  0x8b   : > { %872 = vmatpush1.bf16.msra.mxu1 %v2969_v48 }
  0x8c   : > { %873 = vmatprep.subr.bf16.mxu1 %v3083_v0 }
  0x8f   : > { %874 = vmatpush1.bf16.msra.mxu1 %v3270_v30 }
  0x90   : > { %v411_v61 = vpop.permute.xlu0 %410 }
  0x92   : > { %888 = vmatmul.mubr.bf16.vlgmr.msra.gmra.mrb[8].mxu1 %v3259_v23 }
  0x94   : > { %v416_v63 = vpop.permute.xlu0 %415 }
 0x115   : > { %v526_v49 = vpop.f32.mrb[0].mxu1 }
 0x116   : > { %v528_v50 = vpop.f32.mrb[1].mxu1  ;;  %v3322_v0 = vadd.f32 %v526_v49, %v411_v61 }
 0x117   : > { %v529_v51 = vpop.f32.mrb[2].mxu1  ;;  %v768_v53 = vpop.f32.mrb[0].mxu0 }
 0x118   : > { %v531_v52 = vpop.f32.mrb[3].mxu1  ;;  %v770_v54 = vpop.f32.mrb[1].mxu0  ;;  %v3326_v2 = vadd.f32 %v529_v51, %v416_v63  ;;  %v3330_v4 = vadd.f32 %v768_v53, %v411_v61 }
 0x119   : > { %v771_v55 = vpop.f32.mrb[2].mxu0 }
 0x11a   : > { %v773_v56 = vpop.f32.mrb[3].mxu0  ;;  %v3334_v6 = vadd.f32 %v771_v55, %v416_v63 }
 0x13d   : > { %v647_v57 = vpop.f32.mrb[4].mxu1 }
 0x13e   : > { %v649_v58 = vpop.f32.mrb[5].mxu1  ;;  %v3320_v62 = vadd.f32 %v647_v57, %v411_v61 }
 0x13f   : > { %v650_v59 = vpop.f32.mrb[6].mxu1 }
 0x140   : > { %v652_v60 = vpop.f32.mrb[7].mxu1  ;;  %v3324_v1 = vadd.f32 %v650_v59, %v416_v63  ;;  %v900_v3 = vadd.f32 %v3320_v62, %v3322_v0 }
 0x142   : > { %v901_v5 = vadd.f32 %v3324_v1, %v3326_v2  ;;  %v902_v10 = vadd.f32 %v900_v3, %v3330_v4 }
 0x144   : > { %v903_v15 = vadd.f32 %v901_v5, %v3334_v6 }
 0x165   : > { %v889_v7 = vpop.f32.mrb[8].mxu1 }
 0x166   : > { %v3336_v8 = vadd.f32 %v889_v7, %v411_v61  ;;  %v891_v9 = vpop.f32.mrb[9].mxu1 }
 0x167   : > { %v892_v11 = vpop.f32.mrb[10].mxu1 }
 0x168   : > { %v3339_v12 = vadd.f32 %v892_v11, %v416_v63  ;;  %v894_v13 = vpop.f32.mrb[11].mxu1  ;;  %v904_v14 = vadd.f32 %v902_v10, %v3336_v8 }
 0x16a   : > { %v907_v16 = vsel %vm906_vm2, %v904_v14, 0.0  ;;  %v905_v17 = vadd.f32 %v903_v15, %v3339_v12 }
 0x16b   : > { %908 = vadd.xlane.f32.xlu1 %v907_v16 }
 0x16c   : > { %v910_v18 = vsel %vm906_vm2, %v905_v17, 0.0 }
 0x16f   : > { %911 = vadd.xlane.f32.xlu1 %v910_v18 }
 0x1f8   : > { %v909_v19 = vpop.xlane.xlu1 %908 }
 0x1fc   : > { %v912_v20 = vpop.xlane.xlu1 %911 }
 0x1fd   : > { %v913_v21 = vadd.f32 %v912_v20, %v909_v19 }
 0x1ff   : > { %v914_v22 = vrot.slane %v913_v21, 4 }
 0x201   : > { %v915_v23 = vadd.f32 %v914_v22, %v913_v21 }
 0x203   : > { %v916_v24 = vrot.slane %v915_v23, 2 }
 0x205   : > { %v917_v25 = vadd.f32 %v916_v24, %v915_v23 }
 0x207   : > { %v918_v26 = vrot.slane %v917_v25, 1 }
 0x209   : > { %v919_v27 = vadd.f32 %v918_v26, %v917_v25 }
 0x20b   : > { %v3346_v28 = vmul.f32 0.000625, %v919_v27 }
 0x20d   : > { %v923_v29 = vsub.f32 %v3326_v2, %v3346_v28  ;;  %v922_v30 = vsub.f32 %v3322_v0, %v3346_v28  ;;  %v940_v31 = vsub.f32 %v3320_v62, %v3346_v28  ;;  %v941_v37 = vsub.f32 %v3324_v1, %v3346_v28 }
 0x20e   : > { %v958_v40 = vsub.f32 %v3330_v4, %v3346_v28  ;;  %v959_v43 = vsub.f32 %v3334_v6, %v3346_v28  ;;  %v976_v46 = vsub.f32 %v3336_v8, %v3346_v28  ;;  %v977_v49 = vsub.f32 %v3339_v12, %v3346_v28 }
 0x20f   : > { %v925_v32 = vmul.f32 %v923_v29, %v923_v29  ;;  %v924_v33 = vmul.f32 %v922_v30, %v922_v30  ;;  %v942_v36 = vmul.f32 %v940_v31, %v940_v31  ;;  %v943_v39 = vmul.f32 %v941_v37, %v941_v37 }
 0x210   : > { %v960_v42 = vmul.f32 %v958_v40, %v958_v40  ;;  %v961_v45 = vmul.f32 %v959_v43, %v959_v43  ;;  %v978_v48 = vmul.f32 %v976_v46, %v976_v46  ;;  %v979_v51 = vmul.f32 %v977_v49, %v977_v49  ;;  %v896_v40 = vld [vmem:[%s3730_s3] sm:$0xff] }
 0x211   : > { %v929_v34 = vsel %vm906_vm2, %v925_v32, 0.0  ;;  %v926_v35 = vsel %vm906_vm2, %v924_v33, 0.0  ;;  %v944_v38 = vsel %vm906_vm2, %v942_v36, 0.0  ;;  %v947_v41 = vsel %vm906_vm2, %v943_v39, 0.0  ;;  %v897_v39 = vld [vmem:[%s3730_s3 + $0x8] sm:$0xff] }
 0x212   : > { %930 = vadd.xlane.f32.xlu1 %v929_v34  ;;  %927 = vadd.xlane.f32.xlu0 %v926_v35  ;;  %v962_v44 = vsel %vm906_vm2, %v960_v42, 0.0  ;;  %v965_v47 = vsel %vm906_vm2, %v961_v45, 0.0  ;;  %v980_v50 = vsel %vm906_vm2, %v978_v48, 0.0  ;;  %v983_v52 = vsel %vm906_vm2, %v979_v51, 0.0  ;;  %v899_v48 = vld [vmem:[%s3731_s4 + $0x8] sm:$0xff] }
 0x213   : > { %v3084_v51 = vmov 0.0  }
 0x214   : > { %2657 = vmatprep.subr.bf16.mxu0 %v3084_v51  ;;  %2785 = vmatprep.subr.bf16.mxu1 %v3084_v51 }
 0x215   : > { %2661 = vmatprep.mubr.msk.bf16.mxu0 %vm3086_vm5, %v3084_v51  ;;  %2801 = vmatprep.mubr.msk.bf16.mxu1 %vm3086_vm5, %v3084_v51 }
 0x216   : > { %945 = vadd.xlane.f32.xlu1 %v944_v38 }
 0x21a   : > { %948 = vadd.xlane.f32.xlu1 %v947_v41 }
 0x21e   : > { %963 = vadd.xlane.f32.xlu1 %v962_v44  ;;  %v898_v44 = vld [vmem:[%s3731_s4] sm:$0xff] }
 0x222   : > { %966 = vadd.xlane.f32.xlu1 %v965_v47 }
 0x226   : > { %981 = vadd.xlane.f32.xlu1 %v980_v50  ;;  %v2971_v50 = vld [vmem:[%s3732_s5] sm:$0xff]  }
 0x227   : > { %2658 = vmatpush3.bf16.msra.mxu0 %v2971_v50  ;;  %v2984_v50 = vld [vmem:[%s3732_s5 + $0x68] sm:$0x1f]  }
 0x228   : > { %2659 = vmatprep.subr.bf16.mxu0 %v3084_v51 }
 0x22a   : > { %984 = vadd.xlane.f32.xlu1 %v983_v52  ;;  %v3085_v52 = vmov 65535  }
 0x29f   : > { %v931_v53 = vpop.xlane.xlu1 %930  ;;  %v928_v55 = vpop.xlane.xlu0 %927 }
 0x2a0   : > { %v932_v57 = vadd.f32 %v931_v53, %v928_v55  ;;  %v1075_v53 = vsel %vm1073_vm3, 4294967295, %v3085_v52  ;;  %v3005_v52 = vld [vmem:[%s3734_s7 + $0x10] sm:$0xff]  }
 0x2a2   : > { %v933_v61 = vrot.slane %v932_v57, 4 }
 0x2a3   : > { %v946_v54 = vpop.xlane.xlu1 %945 }
 0x2a4   : > { %v934_v5 = vadd.f32 %v933_v61, %v932_v57 }
 0x2a6   : > { %v935_v13 = vrot.slane %v934_v5, 2 }
 0x2a7   : > { %v949_v56 = vpop.xlane.xlu1 %948 }
 0x2a8   : > { %v950_v58 = vadd.f32 %v949_v56, %v946_v54  ;;  %v936_v18 = vadd.f32 %v935_v13, %v934_v5  ;;  %v3396_v54 = vsel %vm1074_vm4, %v1075_v53, 0 }
 0x2a9   : > { %v1464_v53 = vand.u32 %v2984_v50, %v3396_v54 }
 0x2aa   : > { %v951_v59 = vrot.slane %v950_v58, 4  ;;  %v937_v23 = vrot.slane %v936_v18, 1 }
 0x2ab   : > { %v964_v60 = vpop.xlane.xlu1 %963 }
 0x2ac   : > { %v952_v63 = vadd.f32 %v951_v59, %v950_v58  ;;  %v938_v29 = vadd.f32 %v937_v23, %v936_v18 }
 0x2ae   : > { %v953_v9 = vrot.slane %v952_v63, 2 }
 0x2af   : > { %v967_v3 = vpop.xlane.xlu1 %966 }
 0x2b0   : > { %v968_v7 = vadd.f32 %v967_v3, %v964_v60  ;;  %v954_v15 = vadd.f32 %v953_v9, %v952_v63 }
 0x2b2   : > { %v969_v10 = vrot.slane %v968_v7, 4  ;;  %v955_v21 = vrot.slane %v954_v15, 1 }
 0x2b3   : > { %v982_v11 = vpop.xlane.xlu1 %981 }
 0x2b4   : > { %v970_v14 = vadd.f32 %v969_v10, %v968_v7  ;;  %v956_v26 = vadd.f32 %v955_v21, %v954_v15 }
 0x2b6   : > { %v971_v16 = vrot.slane %v970_v14, 2  ;;  %v957_v32 = vadd.f32 %v956_v26, %v938_v29 }
 0x2b7   : > { %v985_v17 = vpop.xlane.xlu1 %984 }
 0x2b8   : > { %v972_v19 = vadd.f32 %v971_v16, %v970_v14  ;;  %v986_v20 = vadd.f32 %v985_v17, %v982_v11 }
 0x2ba   : > { %v987_v22 = vrot.slane %v986_v20, 4  ;;  %v973_v24 = vrot.slane %v972_v19, 1 }
 0x2bc   : > { %v988_v25 = vadd.f32 %v987_v22, %v986_v20  ;;  %v974_v30 = vadd.f32 %v973_v24, %v972_v19 }
 0x2be   : > { %v989_v27 = vrot.slane %v988_v25, 2  ;;  %v975_v34 = vadd.f32 %v974_v30, %v957_v32  ;;  %v2976_v32 = vld [vmem:[%s3732_s5 + $0x28] sm:$0x1f]  }
 0x2c0   : > { %v990_v31 = vadd.f32 %v989_v27, %v988_v25  ;;  %v2974_v27 = vld [vmem:[%s3732_s5 + $0x18] sm:$0x1f]  }
 0x2c1   : > { %v1143_v30 = vand.u32 %v2974_v27, %v3396_v54  ;;  %v3002_v27 = vld [vmem:[%s3732_s5 + $0xf8] sm:$0x1f]  }
 0x2c2   : > { %v991_v33 = vrot.slane %v990_v31, 1 }
 0x2c4   : > { %v992_v35 = vadd.f32 %v991_v33, %v990_v31  ;;  %v2975_v31 = vld [vmem:[%s3732_s5 + $0x20] sm:$0xff]  }
 0x2c6   : > { %v993_v36 = vadd.f32 %v992_v35, %v975_v34  ;;  %v1208_v34 = vand.u32 %v2976_v32, %v3396_v54  ;;  %v2977_v35 = vld [vmem:[%s3732_s5 + $0x30] sm:$0xff]  }
 0x2c8   : > { %v994_v37 = vmul.f32 0.000625, %v993_v36  ;;  %v2978_v36 = vld [vmem:[%s3732_s5 + $0x38] sm:$0x1f]  }
 0x2ca   : > { %v995_v38 = vadd.f32 1e-05, %v994_v37 }
 0x2cc   : > { %3017 = vrsqrt.f32 %v995_v38  ;;  %v1272_v38 = vand.u32 %v2978_v36, %v3396_v54 }
 0x2d6   : > { %v3018_v41 = vpop.eup %3017 }
 0x2d7   : > { %v998_v42 = vmul.f32 %v3018_v41, %v897_v39  ;;  %v997_v43 = vmul.f32 %v3018_v41, %v896_v40  ;;  %v2979_v39 = vld [vmem:[%s3732_s5 + $0x40] sm:$0xff]   ;;  %v2980_v40 = vld [vmem:[%s3732_s5 + $0x48] sm:$0x1f]  }
 0x2d9   : > { %1010 = vperm.xlu0 %2926, %v998_v42   ;;  %1005 = vperm.xlu1 %2927, %v997_v43   ;;  %v999_v45 = vmul.f32 %v997_v43, %v3346_v28  ;;  %v1000_v47 = vmul.f32 %v998_v42, %v3346_v28  ;;  %v2972_v28 = vld [vmem:[%s3732_s5 + $0x8] sm:$0x1f]   ;;  %v1336_v42 = vand.u32 %v2980_v40, %v3396_v54  ;;  %v2981_v43 = vld [vmem:[%s3732_s5 + $0x50] sm:$0xff]  }
 0x2da   : > { %v1078_v55 = vand.u32 %v2972_v28, %v3396_v54 }
 0x2db   : > { %v1001_v46 = vsub.f32 %v898_v44, %v999_v45  ;;  %v1002_v49 = vsub.f32 %v899_v48, %v1000_v47  ;;  %v2982_v44 = vld [vmem:[%s3732_s5 + $0x58] sm:$0x1f]   ;;  %v3003_v47 = vld [vmem:[%s3734_s7] sm:$0xff]   ;;  %v3004_v48 = vld [vmem:[%s3734_s7 + $0x8] sm:$0xff]  }
 0x2dc   : > { %2660 = vmatpush3.bf16.msra.mxu0 %v1078_v55  ;;  %2786 = vmatpush3.bf16.msra.mxu1 %v3003_v47  ;;  %v3006_v55 = vld [vmem:[%s3734_s7 + $0x18] sm:$0xff]   ;;  %v3016_v47 = vld [vmem:[%s3736_s9 + $0x28] ss:$0 sps:$4 sm:$0x33]  }
 0x2dd   : > { %1017 = vperm.xlu1 %2927, %v1001_v46   ;;  %2665 = vmatprep.subr.bf16.mxu0 %v3084_v51  ;;  %v1400_v46 = vand.u32 %v2982_v44, %v3396_v54  ;;  %v3013_v44 = vld [vmem:[%s3736_s9 + $0x10] sm:$0xff]  }
 0x2de   : > { %2787 = vmatprep.subr.bf16.mxu1 %v3084_v51 }
 0x2e0   : > { %2788 = vmatpush3.bf16.msra.mxu1 %v3004_v48  ;;  %v2246_v48 = vsel %vm2244_vm7, %v3016_v47, 0 }
 0x2e1   : > { %1022 = vperm.xlu1 %2927, %v1002_v49   ;;  %v2983_v49 = vld [vmem:[%s3732_s5 + $0x60] sm:$0xff]   ;;  %2789 = vmatprep.subr.bf16.mxu1 %v3084_v51 }
 0x2e4   : > { %2790 = vmatpush3.bf16.msra.mxu1 %v3005_v52 }
 0x2e5   : > { %2791 = vmatprep.subr.bf16.mxu1 %v3084_v51 }
 0x2e8   : > { %2792 = vmatpush3.bf16.msra.mxu1 %v3006_v55 }
 0x2e9   : > { %2793 = vmatprep.subr.bf16.mxu1 %v3084_v51 }
 0x358   : > { %v1006_v56 = vpop.permute.xlu1 %1005  ;;  %v1011_v61 = vpop.permute.xlu0 %1010 }
 0x359   : > { %v1013_v57 = vmul.f32 %v1006_v56, %v3322_v0  ;;  %v1029_v58 = vmul.f32 %v1006_v56, %v3320_v62  ;;  %v1035_v59 = vmul.f32 %v1006_v56, %v3330_v4  ;;  %v1041_v60 = vmul.f32 %v1006_v56, %v3336_v8  ;;  %v3007_v56 = vld [vmem:[%s3734_s7 + $0x20] sm:$0xff]  }
 0x35a   : > { %v1014_v10 = vmul.f32 %v1011_v61, %v3326_v2  ;;  %v1030_v11 = vmul.f32 %v1011_v61, %v3324_v1  ;;  %v1036_v13 = vmul.f32 %v1011_v61, %v3334_v6  ;;  %v1042_v0 = vmul.f32 %v1011_v61, %v3339_v12  ;;  %v2973_v12 = vld [vmem:[%s3732_s5 + $0x10] sm:$0xff]   ;;  %2794 = vmatpush3.bf16.msra.mxu1 %v3007_v56 }
 0x35b   : > { %2795 = vmatprep.subr.bf16.mxu1 %v3084_v51 }
 0x35c   : > { %v1018_v63 = vpop.permute.xlu1 %1017 }
 0x35d   : > { %v1025_v3 = vadd.f32 %v1018_v63, %v1013_v57  ;;  %v1031_v5 = vadd.f32 %v1029_v58, %v1018_v63  ;;  %v1037_v7 = vadd.f32 %v1035_v59, %v1018_v63  ;;  %v1043_v9 = vadd.f32 %v1041_v60, %v1018_v63  ;;  %v2985_v57 = vld [vmem:[%s3732_s5 + $0x70] sm:$0xff]   ;;  %v2986_v58 = vld [vmem:[%s3732_s5 + $0x78] sm:$0x1f]   ;;  %v3008_v60 = vld [vmem:[%s3734_s7 + $0x28] sm:$0xff]  }
 0x35e   : > { %v1528_v61 = vand.u32 %v2986_v58, %v3396_v54  ;;  %2796 = vmatpush3.bf16.msra.mxu1 %v3008_v60  ;;  %v2987_v63 = vld [vmem:[%s3732_s5 + $0x80] sm:$0xff]  }
 0x35f   : > { %v1027_v14 = vmax.f32 %v1025_v3, 0.0  ;;  %v1033_v62 = vmax.f32 %v1031_v5, 0.0  ;;  %v1039_v15 = vmax.f32 %v1037_v7, 0.0  ;;  %v1045_v4 = vmax.f32 %v1043_v9, 0.0  ;;  %2797 = vmatprep.subr.bf16.mxu1 %v3084_v51  ;;  %v2988_v3 = vld [vmem:[%s3732_s5 + $0x88] sm:$0x1f]  }
 0x360   : > { %v1023_v16 = vpop.permute.xlu1 %1022  ;;  %v1592_v7 = vand.u32 %v2988_v3, %v3396_v54  ;;  %v2989_v9 = vld [vmem:[%s3732_s5 + $0x90] sm:$0xff]  }
 0x361   : > { %v1026_v8 = vadd.f32 %v1023_v16, %v1014_v10  ;;  %v1032_v17 = vadd.f32 %v1030_v11, %v1023_v16  ;;  %v1038_v18 = vadd.f32 %v1036_v13, %v1023_v16  ;;  %v1044_v19 = vadd.f32 %v1042_v0, %v1023_v16  ;;  %v2990_v10 = vld [vmem:[%s3732_s5 + $0x98] sm:$0x1f]   ;;  %v2991_v0 = vld [vmem:[%s3732_s5 + $0xa0] sm:$0xff]  }
 0x362   : > { %v1047_v22 = vmax.f32 %v1027_v14, %v1033_v62  ;;  %v1049_v23 = vmax.f32 %v1039_v15, %v1045_v4  ;;  %v1656_v13 = vand.u32 %v2990_v10, %v3396_v54  ;;  %v2992_v14 = vld [vmem:[%s3732_s5 + $0xa8] sm:$0x1f]   ;;  %v2993_v4 = vld [vmem:[%s3732_s5 + $0xb0] sm:$0xff]   ;;  %v2994_v16 = vld [vmem:[%s3732_s5 + $0xb8] sm:$0x1f]  }
 0x363   : > { %v1028_v20 = vmax.f32 %v1026_v8, 0.0  ;;  %v1034_v21 = vmax.f32 %v1032_v17, 0.0  ;;  %v1040_v2 = vmax.f32 %v1038_v18, 0.0  ;;  %v1046_v24 = vmax.f32 %v1044_v19, 0.0  ;;  %v2995_v18 = vld [vmem:[%s3732_s5 + $0xc0] sm:$0xff]  }
 0x364   : > { %v1051_v6 = vmax.f32 %v1047_v22, %v1049_v23  ;;  %v1720_v15 = vand.u32 %v2992_v14, %v3396_v54  ;;  %v1784_v17 = vand.u32 %v2994_v16, %v3396_v54  ;;  %v2996_v19 = vld [vmem:[%s3732_s5 + $0xc8] sm:$0x1f]   ;;  %v2997_v22 = vld [vmem:[%s3732_s5 + $0xd0] sm:$0xff]   ;;  %v2998_v23 = vld [vmem:[%s3732_s5 + $0xd8] sm:$0x1f]  }
 0x365   : > { %v1048_v1 = vmax.f32 %v1028_v20, %v1034_v21  ;;  %v1050_v25 = vmax.f32 %v1040_v2, %v1046_v24  ;;  %v1848_v21 = vand.u32 %v2996_v19, %v3396_v54  ;;  %v1912_v24 = vand.u32 %v2998_v23, %v3396_v54 }
 0x367   : > { %v1052_v26 = vmax.f32 %v1048_v1, %v1050_v25  ;;  %v2999_v1 = vld [vmem:[%s3732_s5 + $0xe0] sm:$0xff]   ;;  %v3000_v25 = vld [vmem:[%s3732_s5 + $0xe8] sm:$0x1f]  }
 0x369   : > { %v3418_v29 = vpack.c.bf16 %v1052_v26, %v1051_v6  ;;  %v1976_v26 = vand.u32 %v3000_v25, %v3396_v54 }
 0x36b   : > { %2662 = vmatmul.mubr.msk.bf16.vlgmr.msra.gmra.mrb[4].mxu0 %vm906_vm2, %v3418_v29  ;;  %v3434_v33 = vshrl.u32 %v3418_v29, 16  ;;  %v1192_v37 = vrot.slane %v3418_v29, 1  ;;  %v1320_v45 = vrot.slane %v3418_v29, 2  ;;  %v1448_v59 = vrot.slane %v3418_v29, 3 }
 0x36c   : > { %2666 = vmatpush3.bf16.msra.mxu0 %v2973_v12  ;;  %2669 = vmatprep.mubr.msk.bf16.mxu0 %vm3086_vm5, %v3084_v51  ;;  %v1576_v11 = vrot.slane %v3418_v29, 4  ;;  %v1704_v8 = vrot.slane %v3418_v29, 5  ;;  %v1832_v2 = vrot.slane %v3418_v29, 6  ;;  %v3001_v12 = vld [vmem:[%s3732_s5 + $0xf0] sm:$0xff]  }
 0x36d   : > { %2667 = vmatprep.subr.bf16.mxu0 %v3084_v51  ;;  %v1256_v41 = vrot.slane %v3434_v33, 1  ;;  %v1384_v28 = vrot.slane %v3434_v33, 2  ;;  %v1512_v5 = vrot.slane %v3434_v33, 3  ;;  %v1640_v62 = vrot.slane %v3434_v33, 4 }
 0x36e   : > { %v1768_v20 = vrot.slane %v3434_v33, 5  ;;  %v1896_v6 = vrot.slane %v3434_v33, 6  ;;  %v2024_v32 = vrot.slane %v3434_v33, 7 }
 0x370   : > { %2668 = vmatpush3.bf16.msra.mxu0 %v1143_v30  ;;  %v1960_v30 = vrot.slane %v3418_v29, 7 }
 0x371   : > { %2673 = vmatprep.subr.bf16.mxu0 %v3084_v51 }
 0x377   : > { %2670 = vmatmul.mubr.msk.bf16.vlgmr.msra.gmra.mrb[4].mxu0 %vm906_vm2, %v3434_v33  ;;  %v1054_v33 = vld [vmem:[%s3733_s6] sm:$0x1] }
 0x378   : > { %2674 = vmatpush3.bf16.msra.mxu0 %v2975_v31  ;;  %2677 = vmatprep.mubr.msk.bf16.mxu0 %vm3086_vm5, %v3084_v51  ;;  %v2040_v31 = vand.u32 %v3002_v27, %v3396_v54  ;;  %v3010_v54 = vld [vmem:[%s3734_s7 + $0x38] ss:$0 sps:$4 sm:$0xff]  }
 0x379   : > { %2675 = vmatprep.subr.bf16.mxu0 %v3084_v51  ;;  %v2151_v29 = vsel %vm1073_vm3, %v3010_v54, 0 }
 0x37c   : > { %2676 = vmatpush3.bf16.msra.mxu0 %v1208_v34  ;;  %v3009_v34 = vld [vmem:[%s3734_s7 + $0x30] sm:$0xff]  }
 0x37d   : > { %2681 = vmatprep.subr.bf16.mxu0 %v3084_v51  ;;  %2798 = vmatpush3.bf16.msra.mxu1 %v3009_v34 }
 0x37e   : > { %2799 = vmatprep.subr.bf16.mxu1 %v3084_v51 }
 0x381   : > { %2800 = vmatpush3.bf16.msra.mxu1 %v2151_v29 }
 0x382   : > { %2805 = vmatprep.subr.bf16.mxu1 %v3084_v51 }
 0x383   : > { %2678 = vmatmul.mubr.msk.bf16.vlgmr.msra.gmra.mrb[4].mxu0 %vm906_vm2, %v1192_v37 }
 0x384   : > { %2682 = vmatpush3.bf16.msra.mxu0 %v2977_v35  ;;  %2685 = vmatprep.mubr.msk.bf16.mxu0 %vm3086_vm5, %v3084_v51 }
 0x385   : > { %2683 = vmatprep.subr.bf16.mxu0 %v3084_v51 }
 0x388   : > { %2684 = vmatpush3.bf16.msra.mxu0 %v1272_v38 }
 0x389   : > { %2689 = vmatprep.subr.bf16.mxu0 %v3084_v51 }
 0x38f   : > { %2686 = vmatmul.mubr.msk.bf16.vlgmr.msra.gmra.mrb[4].mxu0 %vm906_vm2, %v1256_v41  ;;  %v3011_v41 = vld [vmem:[%s3736_s9] sm:$0xff]  }
 0x390   : > { %2690 = vmatpush3.bf16.msra.mxu0 %v2979_v39  ;;  %2693 = vmatprep.mubr.msk.bf16.mxu0 %vm3086_vm5, %v3084_v51 }
 0x391   : > { %2691 = vmatprep.subr.bf16.mxu0 %v3084_v51 }
 0x394   : > { %2692 = vmatpush3.bf16.msra.mxu0 %v1336_v42 }
 0x395   : > { %2697 = vmatprep.subr.bf16.mxu0 %v3084_v51 }
 0x39b   : > { %2694 = vmatmul.mubr.msk.bf16.vlgmr.msra.gmra.mrb[4].mxu0 %vm906_vm2, %v1320_v45  ;;  %v3014_v45 = vld [vmem:[%s3736_s9 + $0x18] sm:$0xff]  }
 0x39c   : > { %2698 = vmatpush3.bf16.msra.mxu0 %v2981_v43  ;;  %2701 = vmatprep.mubr.msk.bf16.mxu0 %vm3086_vm5, %v3084_v51  ;;  %v3012_v43 = vld [vmem:[%s3736_s9 + $0x8] sm:$0xff]  }
 0x39d   : > { %2699 = vmatprep.subr.bf16.mxu0 %v3084_v51 }
 0x3a0   : > { %2700 = vmatpush3.bf16.msra.mxu0 %v1400_v46  ;;  %v3015_v46 = vld [vmem:[%s3736_s9 + $0x20] sm:$0xff]  }
 0x3a1   : > { %2705 = vmatprep.subr.bf16.mxu0 %v3084_v51 }
 0x3a7   : > { %2702 = vmatmul.mubr.msk.bf16.vlgmr.msra.gmra.mrb[4].mxu0 %vm906_vm2, %v1384_v28 }
 0x3a8   : > { %2706 = vmatpush3.bf16.msra.mxu0 %v2983_v49  ;;  %2709 = vmatprep.mubr.msk.bf16.mxu0 %vm3086_vm5, %v3084_v51  ;;  %v2100_v49 = vld [vmem:[%s3735_s8] sm:$0x1] }
 0x3a9   : > { %2707 = vmatprep.subr.bf16.mxu0 %v3084_v51 }
 0x3ac   : > { %2708 = vmatpush3.bf16.msra.mxu0 %v1464_v53 }
 0x3ad   : > { %2713 = vmatprep.subr.bf16.mxu0 %v3084_v51 }
 0x3b3   : > { %2710 = vmatmul.mubr.msk.bf16.vlgmr.msra.gmra.mrb[4].mxu0 %vm906_vm2, %v1448_v59 }
 0x3b4   : > { %2714 = vmatpush3.bf16.msra.mxu0 %v2985_v57  ;;  %2717 = vmatprep.mubr.msk.bf16.mxu0 %vm3086_vm5, %v3084_v51  ;;  %v2206_v57 = vld [vmem:[%s3737_s10] sm:$0x1] }
 0x3b5   : > { %2715 = vmatprep.subr.bf16.mxu0 %v3084_v51 }
 0x3b8   : > { %2716 = vmatpush3.bf16.msra.mxu0 %v1528_v61 }
 0x3b9   : > { %2721 = vmatprep.subr.bf16.mxu0 %v3084_v51 }
 0x3bf   : > { %2718 = vmatmul.mubr.msk.bf16.vlgmr.msra.gmra.mrb[4].mxu0 %vm906_vm2, %v1512_v5 }
 0x3c0   : > { %2722 = vmatpush3.bf16.msra.mxu0 %v2987_v63  ;;  %2725 = vmatprep.mubr.msk.bf16.mxu0 %vm3086_vm5, %v3084_v51 }
 0x3c1   : > { %2723 = vmatprep.subr.bf16.mxu0 %v3084_v51 }
 0x3c4   : > { %2724 = vmatpush3.bf16.msra.mxu0 %v1592_v7 }
 0x3c5   : > { %2729 = vmatprep.subr.bf16.mxu0 %v3084_v51 }
 0x3cb   : > { %2726 = vmatmul.mubr.msk.bf16.vlgmr.msra.gmra.mrb[4].mxu0 %vm906_vm2, %v1576_v11 }
 0x3cc   : > { %2730 = vmatpush3.bf16.msra.mxu0 %v2989_v9  ;;  %2733 = vmatprep.mubr.msk.bf16.mxu0 %vm3086_vm5, %v3084_v51 }
 0x3cd   : > { %2731 = vmatprep.subr.bf16.mxu0 %v3084_v51 }
 0x3d0   : > { %2732 = vmatpush3.bf16.msra.mxu0 %v1656_v13 }
 0x3d1   : > { %2737 = vmatprep.subr.bf16.mxu0 %v3084_v51 }
 0x3d7   : > { %2734 = vmatmul.mubr.msk.bf16.vlgmr.msra.gmra.mrb[4].mxu0 %vm906_vm2, %v1640_v62 }
 0x3d8   : > { %2738 = vmatpush3.bf16.msra.mxu0 %v2991_v0  ;;  %2741 = vmatprep.mubr.msk.bf16.mxu0 %vm3086_vm5, %v3084_v51 }
 0x3d9   : > { %2739 = vmatprep.subr.bf16.mxu0 %v3084_v51 }
 0x3dc   : > { %2740 = vmatpush3.bf16.msra.mxu0 %v1720_v15 }
 0x3dd   : > { %2745 = vmatprep.subr.bf16.mxu0 %v3084_v51 }
 0x3e3   : > { %2742 = vmatmul.mubr.msk.bf16.vlgmr.msra.gmra.mrb[4].mxu0 %vm906_vm2, %v1704_v8 }
 0x3e4   : > { %2746 = vmatpush3.bf16.msra.mxu0 %v2993_v4  ;;  %2749 = vmatprep.mubr.msk.bf16.mxu0 %vm3086_vm5, %v3084_v51 }
 0x3e5   : > { %2747 = vmatprep.subr.bf16.mxu0 %v3084_v51 }
 0x3e8   : > { %2748 = vmatpush3.bf16.msra.mxu0 %v1784_v17 }
 0x3e9   : > { %2753 = vmatprep.subr.bf16.mxu0 %v3084_v51 }
 0x3ef   : > { %2750 = vmatmul.mubr.msk.bf16.vlgmr.msra.gmra.mrb[4].mxu0 %vm906_vm2, %v1768_v20 }
 0x3f0   : > { %2754 = vmatpush3.bf16.msra.mxu0 %v2995_v18  ;;  %2757 = vmatprep.mubr.msk.bf16.mxu0 %vm3086_vm5, %v3084_v51 }
 0x3f1   : > { %2755 = vmatprep.subr.bf16.mxu0 %v3084_v51 }
 0x3f4   : > { %2756 = vmatpush3.bf16.msra.mxu0 %v1848_v21 }
 0x3f5   : > { %2761 = vmatprep.subr.bf16.mxu0 %v3084_v51 }
 0x3fb   : > { %2758 = vmatmul.mubr.msk.bf16.vlgmr.msra.gmra.mrb[4].mxu0 %vm906_vm2, %v1832_v2 }
 0x3fc   : > { %2762 = vmatpush3.bf16.msra.mxu0 %v2997_v22  ;;  %2765 = vmatprep.mubr.msk.bf16.mxu0 %vm3086_vm5, %v3084_v51 }
 0x3fd   : > { %2763 = vmatprep.subr.bf16.mxu0 %v3084_v51 }
 0x400   : > { %2764 = vmatpush3.bf16.msra.mxu0 %v1912_v24 }
 0x401   : > { %2769 = vmatprep.subr.bf16.mxu0 %v3084_v51 }
 0x407   : > { %2766 = vmatmul.mubr.msk.bf16.vlgmr.msra.gmra.mrb[4].mxu0 %vm906_vm2, %v1896_v6 }
 0x408   : > { %2770 = vmatpush3.bf16.msra.mxu0 %v2999_v1  ;;  %2773 = vmatprep.mubr.msk.bf16.mxu0 %vm3086_vm5, %v3084_v51 }
 0x409   : > { %2771 = vmatprep.subr.bf16.mxu0 %v3084_v51 }
 0x40c   : > { %2772 = vmatpush3.bf16.msra.mxu0 %v1976_v26 }
 0x40d   : > { %2777 = vmatprep.subr.bf16.mxu0 %v3084_v51 }
 0x413   : > { %2774 = vmatmul.mubr.msk.bf16.vlgmr.msra.gmra.mrb[4].mxu0 %vm906_vm2, %v1960_v30 }
 0x414   : > { %2778 = vmatpush3.bf16.msra.mxu0 %v3001_v12  ;;  %2781 = vmatprep.mubr.msk.bf16.mxu0 %vm3086_vm5, %v3084_v51 }
 0x415   : > { %2779 = vmatprep.subr.bf16.mxu0 %v3084_v51 }
 0x418   : > { %2780 = vmatpush3.bf16.msra.mxu0 %v2040_v31 }
 0x41f   : > { %2782 = vmatmul.mubr.msk.bf16.vlgmr.msra.gmra.mrb[4].mxu0 %vm906_vm2, %v2024_v32 }
 0x4f2   : > { %v2076_v35 = vpop.f32.mrb[4].mxu0 }
 0x4f3   : > { %v2821_v36 = vadd.f32 %v2076_v35, %v1054_v33  ;;  %v2783_v37 = vpop.f32.mrb[5].mxu0 }
 0x4f4   : > { %v2079_v38 = vpop.f32.mrb[6].mxu0 }
 0x4f5   : > { %v2083_v39 = vmax.f32 %v2821_v36, 0.0  ;;  %v2784_v40 = vpop.f32.mrb[7].mxu0 }
 0x4f7   : > { %v2084_v42 = vpack.c.bf16 %v2083_v39, %v2083_v39 }
 0x4f9   : > { %2802 = vmatmul.mubr.msk.bf16.vlgmr.msra.gmra.mrb[12].mxu1 %vm2146_vm6, %v2084_v42 }
 0x4fa   : > { %2806 = vmatpush3.bf16.msra.mxu1 %v3011_v41  ;;  %2817 = vmatprep.mubr.msk.bf16.mxu1 %vm3086_vm5, %v3084_v51 }
 0x4fb   : > { %2807 = vmatprep.subr.bf16.mxu1 %v3084_v51 }
 0x4fe   : > { %2808 = vmatpush3.bf16.msra.mxu1 %v3012_v43 }
 0x4ff   : > { %2809 = vmatprep.subr.bf16.mxu1 %v3084_v51 }
 0x502   : > { %2810 = vmatpush3.bf16.msra.mxu1 %v3013_v44 }
 0x503   : > { %2811 = vmatprep.subr.bf16.mxu1 %v3084_v51 }
 0x506   : > { %2812 = vmatpush3.bf16.msra.mxu1 %v3014_v45 }
 0x507   : > { %2813 = vmatprep.subr.bf16.mxu1 %v3084_v51 }
 0x50a   : > { %2814 = vmatpush3.bf16.msra.mxu1 %v3015_v46 }
 0x50b   : > { %2815 = vmatprep.subr.bf16.mxu1 %v3084_v51 }
 0x50e   : > { %2816 = vmatpush3.bf16.msra.mxu1 %v2246_v48 }
 0x5cc   : > { %v2187_v50 = vpop.f32.mrb[12].mxu1 }
 0x5cd   : > { %v2188_v28 = vadd.f32 %v2187_v50, %v2100_v49  ;;  %v2803_v52 = vpop.f32.mrb[13].mxu1 }
 0x5ce   : > { %v2190_v53 = vpop.f32.mrb[14].mxu1 }
 0x5cf   : > { %v2193_v55 = vmax.f32 %v2188_v28, 0.0  ;;  %v2804_v56 = vpop.f32.mrb[15].mxu1 }
 0x5d1   : > { %v2194_v51 = vpack.c.bf16 %v2193_v55, %v2193_v55 }
 0x5d3   : > { %2818 = vmatmul.mubr.msk.bf16.vlgmr.msra.gmra.mrb[16].mxu1 %vm2240_vm8, %v2194_v51 }
 0x6a6   : > { %v2282_v58 = vpop.f32.mrb[16].mxu1 }
 0x6a7   : > { %v2283_v59 = vadd.f32 %v2282_v58, %v2206_v57  ;;  %v2819_v60 = vpop.f32.mrb[17].mxu1 }
 0x6a8   : > { %v2285_v61 = vpop.f32.mrb[18].mxu1 }
 0x6a9   : > { %v2820_v63 = vpop.f32.mrb[19].mxu1  ;;  %2289 = vst.msk [vmem:[%s378_s30] sm:$0x1] %vm2288_vm9, %v2283_v59 }
 0x6aa   : > { %3032 = shalt.err (!%p3029_p3)
}
 0x6ab   : > { %s3033_s22 = scalar_lea.hbm %s3685_s15, 16  ;;  %s3037_s14 = scalar_lea.hbm %s3738_s11, 32 }
 0x6ac   : > { %p3034_p4 = scmp.ne.s32.totalorder %s3685_s15, %s3033_s22  ;;  %p3038_p9 = scmp.lt.u32.totalorder %s3685_s15, %s3738_s11 }
 0x6ad   : > { %p3039_p10 = scmp.lt.u32.totalorder %s3037_s14, %s3033_s22  ;;  %p3041_p12 = scmp.lt.u32.totalorder %s3033_s22, %s3685_s15 }
 0x6ae   : > { %p3035_p7 = pnand %p3034_p4, %p3186_p5 }
 0x6af   : > { %p3040_p11 = por %p3039_p10, %p3038_p9 }
 0x6b0   : > { %p3036_p8 = pneg %p3035_p7 }
 0x6b1   : > { %p3042_p13 = por %p3041_p12, %p3040_p11 }
 0x6b3   : > { %p3043_p0 = pnand %p3042_p13, %p3036_p8 }
 0x6b5   : > { %3046 = shalt.err (!%p3043_p0)
}
 0x6b6   : > { %2883 = dma.vmem_to_hbm [thread:$0]  (%p3186_p5), %s3687_s12, 16, %s3685_s15, %s2291_s21  }
 0x6b7 PF: > { %p2889_p1 = scmp.ge.s32.totalorder %s3081_s20, 2  ;;  %s2315_s16 = sand.u32 1, %s3069_s17  }
 0x6b8   : > { %s2316_s13 = scalar_lea.sflag [#allocation3], %s2315_s16 }
 0x6b9   : > { %p2886_p2 = pnand %p2889_p1, %p3190_p6 }
 0x6bb   : > { %3064 = dma.done.wait (!%p2886_p2), %s2316_s13, 16  }
 0x6bc   : > { %3066 = vsyncadd (!%p2886_p2), %s2316_s13, 4294967280  ;;  %p21_p3 = scmp.ge.s32.totalorder %s3173_s23, 4   ;;  %s3741_s17 = smov %s3073_s18 }
 0x6bd   : > { %s3742_s18 = smov %s3077_s19  ;;  %s3743_s19 = smov %s3184_s26 }
 0x6be   : > { %s3744_s20 = smov %s3173_s23  ;;  %23 = sbr.rel (!%p21_p3) target bundleno = 3 (0x3), region = 117 }
 0x6c5   :  { %2320 = vsyncpa [#allocation3], 1 }
 0x6c6   :  { %2322 = vsyncpa [#allocation3 + $0x1], 1 }

</bundles_post_ra>
